<compile_context>
chip_gen: v7x
topology: tpu7x:2x2x1
jax: 0.10.0
libtpu: 0.0.40
codegen_flags: <defaults>
</compile_context>

<pallas_src>
import functools

import jax
import jax.numpy as jnp
from jax import lax
from jax.experimental import pallas as pl
from jax.experimental.pallas import tpu as pltpu


def _round_up(x, m):
    return (x + m - 1) // m * m


# ----------------------------- Pallas kernel --------------------------------
def _moe_kernel(flags_ref, fetch_ref,                      # scalar prefetch (SMEM)
                x_ref, wgu_ref, wd_ref, rw_ref,            # inputs (VMEM)
                o_ref,                                     # output (VMEM)
                acc_ref,                                   # scratch (VMEM, f32)
                *, num_experts, chunk):
    t = pl.program_id(0)
    e = pl.program_id(1)
    c = pl.program_id(2)
    last_e = pl.num_programs(1) - 1
    last_c = pl.num_programs(2) - 1

    @pl.when((e == 0) & (c == 0))
    def _init():
        acc_ref[...] = jnp.zeros_like(acc_ref)

    # Skip all compute for experts with no routed tokens in this token tile.
    @pl.when(flags_ref[t * num_experts + e] != 0)
    def _compute():
        x = x_ref[...]                                        # (tm, Hp)
        wgu = wgu_ref[...]                                    # (Hp, 2*Ic) fused gate|up chunk
        wd = wd_ref[...]                                      # (Ic, Hp) down-proj chunk

        gu = jnp.dot(x, wgu, preferred_element_type=jnp.float32)   # (tm, 2*Ic)
        g = gu[:, :chunk]
        u = gu[:, chunk:]
        h = (g * jax.nn.sigmoid(g)) * u                            # SiLU(g) * u, f32

        # Select routing-weight column e from the lane-dense (tm, E) block.
        rw = rw_ref[...]                                           # (tm, E) f32
        sel = lax.broadcasted_iota(jnp.int32, rw.shape, 1) == e
        w_col = jnp.sum(jnp.where(sel, rw, 0.0), axis=1, keepdims=True)  # (tm, 1)

        # Scale before the down-proj (tm*Ic multiplies, not tm*Hp) -> the
        # accumulate is a pure add on the f32 scratch.
        hw = (h * w_col).astype(x.dtype)                           # (tm, Ic)
        acc_ref[...] += jnp.dot(hw, wd, preferred_element_type=jnp.float32)

    @pl.when((e == last_e) & (c == last_c))
    def _finalize():
        o_ref[...] = acc_ref[...].astype(o_ref.dtype)


# ----------------------- One-time weight preparation -------------------------
def prepare_expert_weights(wg, wu, wd, *, compute_dtype, i_chunk=512):
    """Pad + fuse + chunk expert weights ONCE (parameter-load time).

    wg/wu: (E, H, I)   wd: (E, I, H)
    Returns fused gate|up weights (E, Kc, Hp, 2*Ic) and down-proj (E, Kc, Ic, Hp).
    """
    E, H, I = wg.shape
    Hp = _round_up(H, 128)
    Ic = min(_round_up(i_chunk, 128), _round_up(I, 128))
    Ip = _round_up(I, Ic)
    Kc = Ip // Ic
    dt = compute_dtype

    wg_p = jnp.zeros((E, Hp, Ip), dt).at[:, :H, :I].set(wg.astype(dt))
    wu_p = jnp.zeros((E, Hp, Ip), dt).at[:, :H, :I].set(wu.astype(dt))
    # Chunk the intermediate dim: (E, Hp, Kc, Ic) -> (E, Kc, Hp, Ic)
    wg_c = wg_p.reshape(E, Hp, Kc, Ic).transpose(0, 2, 1, 3)
    wu_c = wu_p.reshape(E, Hp, Kc, Ic).transpose(0, 2, 1, 3)
    wgu_p = jnp.concatenate([wg_c, wu_c], axis=-1)             # (E, Kc, Hp, 2*Ic)
    wd_p = (jnp.zeros((E, Ip, Hp), dt).at[:, :I, :H].set(wd.astype(dt))
            .reshape(E, Kc, Ic, Hp))                            # (E, Kc, Ic, Hp)

    return {
        "wgu": wgu_p,
        "wd": wd_p,
        "meta": dict(E=E, H=H, I=I, Hp=Hp, Ip=Ip, Ic=Ic, Kc=Kc, dtype=dt),
    }


# ------------------------------- Wrapper -------------------------------------
def moe_experts_pallas(x_flat, prepared, rw_dense, *, token_tile=256,
                       weight_buffers=2, use_core_parallel=False, top_k_hint=None):
    """x_flat: (T, H) in compute dtype; prepared: output of prepare_expert_weights;
    rw_dense: (T, E) f32 dense routing matrix (exact zeros for unselected)."""
    meta = prepared["meta"]
    E, H, Hp, Ip, Ic, Kc = (meta["E"], meta["H"], meta["Hp"], meta["Ip"],
                            meta["Ic"], meta["Kc"])
    wgu_p, wd_p = prepared["wgu"], prepared["wd"]
    T = x_flat.shape[0]
    dtype = x_flat.dtype
    itemsize = jnp.dtype(dtype).itemsize

    # Token tile: never below 128 rows (keeps MXU operands well shaped for decode;
    # the zero rows are free because those steps are weight-DMA bound anyway).
    tm = token_tile if T >= token_tile else _round_up(max(T, 128), 128)
    Tp = _round_up(T, tm)
    Tt = Tp // tm

    # Per-call activation/routing padding only (weights are pre-fused/padded).
    x_p = jnp.zeros((Tp, Hp), dtype).at[:T, :H].set(x_flat)
    rw_p = jnp.zeros((Tp, E), jnp.float32).at[:T, :].set(rw_dense.astype(jnp.float32))

    # Per-(token_tile, expert) activity flags.
    tile_rw = rw_p.reshape(Tt, tm, E)
    flags = jnp.sum(jnp.abs(tile_rw), axis=1) > 0                       # (Tt, E) bool
    flags_flat = flags.reshape(-1)
    # Forward-filled fetch table over the flattened (t, e) grid order: carries the
    # last fetched expert across token-tile boundaries so inactive experts never
    # force a redundant weight DMA.
    eids_flat = jnp.tile(jnp.arange(E, dtype=jnp.int32), Tt)
    steps = jnp.arange(Tt * E, dtype=jnp.int32)
    last_active = lax.cummax(jnp.where(flags_flat, steps, -1), axis=0)
    fetch_flat = eids_flat[jnp.maximum(last_active, 0)].astype(jnp.int32)
    flags_i32 = flags_flat.astype(jnp.int32)

    # index_maps receive the scalar-prefetch refs as trailing positional args.
    def x_map(t, e, c, flags_r, fetch_r):
        return (t, 0)

    def rw_map(t, e, c, flags_r, fetch_r):
        return (t, 0)

    def o_map(t, e, c, flags_r, fetch_r):
        return (t, 0)

    def w_map(t, e, c, flags_r, fetch_r):
        # Active expert: fetch its chunk c. Inactive: repeat the previously
        # fetched expert's LAST chunk -> identical block index to the previous
        # grid step for every chunk step -> weight DMA skipped entirely.
        idx = t * E + e
        active = flags_r[idx]                  # 0/1 int32
        ee = fetch_r[idx]                      # == e when active
        cc = c * active + (Kc - 1) * (1 - active)
        return (ee, cc, 0, 0)

    w_kwargs = {} if weight_buffers == 2 else {"pipeline_mode": pl.Buffered(weight_buffers)}
    in_specs = [
        pl.BlockSpec((tm, Hp), x_map),                                   # tokens (resident over e, c)
        pl.BlockSpec((pl.Squeezed(), pl.Squeezed(), Hp, 2 * Ic), w_map, **w_kwargs),
        pl.BlockSpec((pl.Squeezed(), pl.Squeezed(), Ic, Hp), w_map, **w_kwargs),
        pl.BlockSpec((tm, E), rw_map),                                   # routing weights
    ]

    # Cost estimate scaled by the expected active-expert count per tile.
    tokens_per_tile = min(T, tm)
    exp_active = E if top_k_hint is None else int(min(E, max(1, tokens_per_tile * top_k_hint)))
    per_expert_flops = 2 * tm * (Hp * 2 * Ip + Ip * Hp)
    flops = Tt * exp_active * per_expert_flops
    transcendentals = Tt * exp_active * tm * Ip
    bytes_accessed = (x_p.size * itemsize + Tp * Hp * itemsize
                      + Tt * exp_active * (Hp * 2 * Ip + Ip * Hp) * itemsize
                      + rw_p.size * 4)
    cost = pl.CostEstimate(flops=int(flops), transcendentals=int(transcendentals),
                           bytes_accessed=int(bytes_accessed))

    # VMEM budget: weight chunks (pipelined), x/out (double-buffered), f32 acc,
    # routing block, and the f32 gu/h/hw intermediates, plus real headroom.
    w_tile_bytes = (Hp * 2 * Ic + Ic * Hp) * itemsize
    io_tile_bytes = tm * Hp * itemsize
    rw_tile_bytes = tm * _round_up(E, 128) * 4
    est_vmem = (weight_buffers * w_tile_bytes
                + 2 * io_tile_bytes                 # x, double-buffered
                + 2 * io_tile_bytes                 # out, double-buffered
                + tm * Hp * 4                       # f32 accumulator scratch
                + 2 * rw_tile_bytes                 # routing-weight block
                + tm * 2 * Ic * 4                   # gu intermediate (f32)
                + tm * Ic * 4                       # h intermediate (f32)
                + tm * Ic * itemsize                # hw intermediate
                + (4 << 20))                        # headroom
    try:
        # Raise the cap on generations with more physical VMEM (v6e/v5e: 128 MiB).
        cap = int(pltpu.get_tpu_info().vmem_capacity_bytes) * 3 // 4
    except Exception:
        cap = 64 * 1024 * 1024
    vmem_limit = int(min(cap, max(est_vmem, 8 * 1024 * 1024)))

    # TODO(synk): on v7x pass use_core_parallel=True (with Tt >= 2) so the token
    # axis is actually sharded across both TensorCores.
    token_sem = pltpu.CORE_PARALLEL if use_core_parallel else "parallel"

    out_p = pl.pallas_call(
        functools.partial(_moe_kernel, num_experts=E, chunk=Ic),
        out_shape=jax.ShapeDtypeStruct((Tp, Hp), dtype),
        grid_spec=pltpu.PrefetchScalarGridSpec(
            num_scalar_prefetch=2,
            grid=(Tt, E, Kc),
            in_specs=in_specs,
            out_specs=pl.BlockSpec((tm, Hp), o_map),      # accumulator-resident
            scratch_shapes=[pltpu.VMEM((tm, Hp), jnp.float32)],
        ),
        compiler_params=pltpu.CompilerParams(
            dimension_semantics=(token_sem, "arbitrary", "arbitrary"),
            vmem_limit_bytes=vmem_limit),
        cost_estimate=cost,
    )(flags_i32, fetch_flat, x_p, wgu_p, wd_p, rw_p)

    return out_p[:T, :H]


# ------------------------------ Full module ---------------------------------
def deepseek_v2_moe_forward(hidden_states, router_w, prepared, num_experts_per_tok):
    """hidden_states: (B, S, H). Routing glue in JAX; expert MLPs in Pallas.

    `prepared` = prepare_expert_weights(...) (computed once at load time)."""
    B, S, H = hidden_states.shape
    x_flat = hidden_states.reshape(-1, H)
    T = x_flat.shape[0]
    E = router_w.shape[1]

    # --- routing: gate matmul + softmax(f32) + top-k + renormalize ---
    logits = x_flat.astype(jnp.float32) @ router_w.astype(jnp.float32)
    routing_weights = jax.nn.softmax(logits, axis=1)
    top_w, top_idx = lax.top_k(routing_weights, num_experts_per_tok)
    top_w = top_w / jnp.sum(top_w, axis=-1, keepdims=True)

    # dense (T, E) routing matrix; unselected experts get exactly 0.
    rw_dense = jnp.zeros((T, E), jnp.float32)
    rw_dense = rw_dense.at[jnp.arange(T)[:, None], top_idx].set(top_w)

    cdt = prepared["meta"]["dtype"]
    out_flat = moe_experts_pallas(x_flat.astype(cdt), prepared, rw_dense,
                                  top_k_hint=num_experts_per_tok)
    return out_flat.astype(hidden_states.dtype).reshape(B, S, H)


# ------------------------------ Reference -----------------------------------
def reference_forward(hidden_states, params, num_experts_per_tok):
    B, S, H = hidden_states.shape
    x = hidden_states.reshape(-1, H).astype(jnp.float32)
    T = x.shape[0]
    E = params["w_gate_router"].shape[1]

    logits = x @ params["w_gate_router"].astype(jnp.float32)
    rw = jax.nn.softmax(logits, axis=1)
    top_w, top_idx = lax.top_k(rw, num_experts_per_tok)
    top_w = top_w / jnp.sum(top_w, axis=-1, keepdims=True)
    rw_dense = jnp.zeros((T, E), jnp.float32)
    rw_dense = rw_dense.at[jnp.arange(T)[:, None], top_idx].set(top_w)

    out = jnp.zeros_like(x)
    for e in range(E):
        g = x @ params["wg"][e].astype(jnp.float32)
        u = x @ params["wu"][e].astype(jnp.float32)
        h = jax.nn.silu(g) * u
        y = h @ params["wd"][e].astype(jnp.float32)
        out = out + rw_dense[:, e:e + 1] * y
    return out.reshape(B, S, H).astype(hidden_states.dtype)


# -------------------------------- Main ---------------------------------------
if __name__ == "__main__":
    # Small config consistent with DeepSeekV2MoE:
    B, S = 2, 8          # batch, sequence -> T = 16 tokens
    H = 32               # hidden_size
    I = 64               # intermediate_size
    E = 4                # n_routed_experts
    TOP_K = 2            # num_experts_per_tok

    key = jax.random.PRNGKey(0)
    k_x, k_r, k_g, k_u, k_d = jax.random.split(key, 5)

    hidden_states = jax.random.normal(k_x, (B, S, H), dtype=jnp.float32)

    params = {
        # router gate: torch nn.Linear(H, E) => effective (H, E) matmul matrix
        "w_gate_router": 0.1 * jax.random.normal(k_r, (H, E), dtype=jnp.float32),
        # expert projections (already transposed to matmul layout)
        "wg": 0.1 * jax.random.normal(k_g, (E, H, I), dtype=jnp.float32),
        "wu": 0.1 * jax.random.normal(k_u, (E, H, I), dtype=jnp.float32),
        "wd": 0.1 * jax.random.normal(k_d, (E, I, H), dtype=jnp.float32),
    }

    ref = jax.block_until_ready(reference_forward(hidden_states, params, TOP_K))

    # One-time weight preparation (parameter-load time, NOT per forward call).
    prep_f32 = prepare_expert_weights(params["wg"], params["wu"], params["wd"],
                                      compute_dtype=jnp.float32, i_chunk=512)
    prep_bf16 = prepare_expert_weights(params["wg"], params["wu"], params["wd"],
                                       compute_dtype=jnp.bfloat16, i_chunk=512)

    # f32 path: tight correctness check.
    out = jax.block_until_ready(
        deepseek_v2_moe_forward(hidden_states, params["w_gate_router"], prep_f32, TOP_K))
    assert out.shape == (B, S, H)
    assert bool(jnp.allclose(out, ref, rtol=1e-5, atol=1e-5)), "f32 mismatch vs reference"

    # bf16 compute path (production mode: native bf16 MXU, f32 accumulation).
    out_bf16 = jax.block_until_ready(
        deepseek_v2_moe_forward(hidden_states, params["w_gate_router"], prep_bf16, TOP_K))
    assert bool(jnp.allclose(out_bf16.astype(jnp.float32), ref.astype(jnp.float32),
                             rtol=1e-1, atol=1e-1)), "bf16 mismatch vs reference"

    print("KERNEL_OK")
</pallas_src>

<mosaic_0001>
module attributes {stable_mosaic.version = 11 : i64} {
  func.func @_moe_kernel(%arg0: i32, %arg1: i32, %arg2: i32, %arg3: memref<4xi32, #tpu.memory_space<smem>>, %arg4: memref<4xi32, #tpu.memory_space<smem>>, %arg5: memref<128x128xf32, #tpu.memory_space<vmem>>, %arg6: memref<1x1x128x256xf32, #tpu.memory_space<vmem>>, %arg7: memref<1x1x128x128xf32, #tpu.memory_space<vmem>>, %arg8: memref<128x4xf32, #tpu.memory_space<vmem>>, %arg9: memref<128x128xf32, #tpu.memory_space<vmem>>, %arg10: memref<128x128xf32, #tpu.memory_space<vmem>>) attributes {dimension_semantics = [#tpu.dimension_semantics<parallel>, #tpu.dimension_semantics<arbitrary>, #tpu.dimension_semantics<arbitrary>], iteration_bounds = array<i64: 1, 4, 1>, scalar_prefetch = 2 : i64, scratch_operands = 1 : i64, tpu.core_type = #tpu.core_type<tc>, window_params = [{transform_indices = @transform_0, window_bounds = array<i64: 128, 128>}, {transform_indices = @transform_1, window_bounds = array<i64: 1, 1, 128, 256>}, {transform_indices = @transform_2, window_bounds = array<i64: 1, 1, 128, 128>}, {transform_indices = @transform_3, window_bounds = array<i64: 128, 4>}, {transform_indices = @transform_4, window_bounds = array<i64: 128, 128>}]} {
    %c0_i32 = arith.constant 0 : i32
    %0 = arith.cmpi eq, %arg1, %c0_i32 : i32
    %c0_i32_0 = arith.constant 0 : i32
    %1 = arith.cmpi eq, %arg2, %c0_i32_0 : i32
    %2 = arith.andi %0, %1 : i1
    %3 = arith.extui %2 : i1 to i32
    %c0_i32_1 = arith.constant 0 : i32
    %4 = arith.cmpi ne, %3, %c0_i32_1 : i32
    scf.if %4 {
      %cst = arith.constant 0.000000e+00 : f32
      %17 = vector.broadcast %cst : f32 to vector<128x128xf32>
      %c0 = arith.constant 0 : index
      %c0_6 = arith.constant 0 : index
      %18 = vector.load %arg10[%c0, %c0_6] : memref<128x128xf32, #tpu.memory_space<vmem>>, vector<128x128xf32>
      tpu.vector_store %arg10[%c0, %c0_6], %17 {strides = array<i32>} : memref<128x128xf32, #tpu.memory_space<vmem>>, vector<128x128xf32>,
    } else {
    }
    %c4_i32 = arith.constant 4 : i32
    %5 = arith.muli %arg0, %c4_i32 : i32
    %6 = arith.addi %5, %arg1 : i32
    %7 = arith.index_cast %6 : i32 to index
    %8 = memref.load %arg3[%7] : memref<4xi32, #tpu.memory_space<smem>>
    %c0_i32_2 = arith.constant 0 : i32
    %9 = arith.cmpi ne, %8, %c0_i32_2 : i32
    %10 = arith.extui %9 : i1 to i32
    %c0_i32_3 = arith.constant 0 : i32
    %11 = arith.cmpi ne, %10, %c0_i32_3 : i32
    scf.if %11 {
      %c0 = arith.constant 0 : index
      %c0_6 = arith.constant 0 : index
      %17 = vector.load %arg5[%c0, %c0_6] : memref<128x128xf32, #tpu.memory_space<vmem>>, vector<128x128xf32>
      %c0_7 = arith.constant 0 : index
      %c0_8 = arith.constant 0 : index
      %c0_9 = arith.constant 0 : index
      %c0_10 = arith.constant 0 : index
      %18 = vector.load %arg6[%c0_7, %c0_8, %c0_9, %c0_10] : memref<1x1x128x256xf32, #tpu.memory_space<vmem>>, vector<1x1x128x256xf32>
      %19 = vector.shape_cast %18 : vector<1x1x128x256xf32> to vector<128x256xf32>
      %c0_11 = arith.constant 0 : index
      %c0_12 = arith.constant 0 : index
      %c0_13 = arith.constant 0 : index
      %c0_14 = arith.constant 0 : index
      %20 = vector.load %arg7[%c0_11, %c0_12, %c0_13, %c0_14] : memref<1x1x128x128xf32, #tpu.memory_space<vmem>>, vector<1x1x128x128xf32>
      %21 = vector.shape_cast %20 : vector<1x1x128x128xf32> to vector<128x128xf32>
      %cst = arith.constant dense<0.000000e+00> : vector<128x256xf32>
      %22 = tpu.matmul %17, %19, %cst {dimension_numbers = #tpu.dot_dimension_numbers<[1], [0], [0], [1], [0, 0, 1, 1], [], []>} : vector<128x128xf32>, vector<128x256xf32>, vector<128x256xf32> -> vector<128x256xf32>
      %23 = vector.extract_strided_slice %22 {offsets = [0, 0], sizes = [128, 128], strides = [1, 1]} : vector<128x256xf32> to vector<128x128xf32>
      %24 = vector.extract_strided_slice %22 {offsets = [0, 128], sizes = [128, 128], strides = [1, 1]} : vector<128x256xf32> to vector<128x128xf32>
      %25 = arith.negf %23 : vector<128x128xf32>
      %26 = math.exp %25 : vector<128x128xf32>
      %cst_15 = arith.constant 1.000000e+00 : f32
      %27 = vector.broadcast %cst_15 : f32 to vector<128x128xf32>
      %28 = arith.addf %27, %26 : vector<128x128xf32>
      %29 = arith.divf %27, %28 : vector<128x128xf32>
      %30 = arith.mulf %23, %29 : vector<128x128xf32>
      %31 = arith.mulf %30, %24 : vector<128x128xf32>
      %c0_16 = arith.constant 0 : index
      %c0_17 = arith.constant 0 : index
      %32 = vector.load %arg8[%c0_16, %c0_17] : memref<128x4xf32, #tpu.memory_space<vmem>>, vector<128x4xf32>
      %33 = tpu.iota {dimensions = array<i32: 1>} : vector<128x4xi32>
      %34 = vector.broadcast %arg1 : i32 to vector<128x4xi32>
      %35 = arith.cmpi eq, %33, %34 : vector<128x4xi32>
      %cst_18 = arith.constant 0.000000e+00 : f32
      %36 = vector.broadcast %cst_18 : f32 to vector<128x4xf32>
      %37 = arith.select %35, %32, %36 : vector<128x4xi1>, vector<128x4xf32>
      %cst_19 = arith.constant dense<0.000000e+00> : vector<128xf32>
      %38 = vector.multi_reduction <add>, %37, %cst_19 [1] : vector<128x4xf32> to vector<128xf32>
      %39 = vector.shape_cast %38 : vector<128xf32> to vector<128x1xf32>
      %40 = vector.broadcast %39 : vector<128x1xf32> to vector<128x128xf32>
      %41 = arith.mulf %31, %40 : vector<128x128xf32>
      %c0_20 = arith.constant 0 : index
      %c0_21 = arith.constant 0 : index
      %42 = vector.load %arg10[%c0_20, %c0_21] : memref<128x128xf32, #tpu.memory_space<vmem>>, vector<128x128xf32>
      %cst_22 = arith.constant dense<0.000000e+00> : vector<128x128xf32>
      %43 = tpu.matmul %41, %21, %cst_22 {dimension_numbers = #tpu.dot_dimension_numbers<[1], [0], [0], [1], [0, 0, 1, 1], [], []>} : vector<128x128xf32>, vector<128x128xf32>, vector<128x128xf32> -> vector<128x128xf32>
      %44 = arith.addf %42, %43 : vector<128x128xf32>
      %c0_23 = arith.constant 0 : index
      %c0_24 = arith.constant 0 : index
      %45 = vector.load %arg10[%c0_23, %c0_24] : memref<128x128xf32, #tpu.memory_space<vmem>>, vector<128x128xf32>
      tpu.vector_store %arg10[%c0_23, %c0_24], %44 {strides = array<i32>} : memref<128x128xf32, #tpu.memory_space<vmem>>, vector<128x128xf32>,
    } else {
    }
    %c3_i32 = arith.constant 3 : i32
    %12 = arith.cmpi eq, %arg1, %c3_i32 : i32
    %c0_i32_4 = arith.constant 0 : i32
    %13 = arith.cmpi eq, %arg2, %c0_i32_4 : i32
    %14 = arith.andi %12, %13 : i1
    %15 = arith.extui %14 : i1 to i32
    %c0_i32_5 = arith.constant 0 : i32
    %16 = arith.cmpi ne, %15, %c0_i32_5 : i32
    scf.if %16 {
      %c0 = arith.constant 0 : index
      %c0_6 = arith.constant 0 : index
      %17 = vector.load %arg10[%c0, %c0_6] : memref<128x128xf32, #tpu.memory_space<vmem>>, vector<128x128xf32>
      %c0_7 = arith.constant 0 : index
      %c0_8 = arith.constant 0 : index
      %18 = vector.load %arg9[%c0_7, %c0_8] : memref<128x128xf32, #tpu.memory_space<vmem>>, vector<128x128xf32>
      tpu.vector_store %arg9[%c0_7, %c0_8], %17 {strides = array<i32>} : memref<128x128xf32, #tpu.memory_space<vmem>>, vector<128x128xf32>,
    } else {
    }
    return
  }
  func.func @transform_0(%arg0: i32, %arg1: i32, %arg2: i32, %arg3: memref<4xi32, #tpu.memory_space<smem>>, %arg4: memref<4xi32, #tpu.memory_space<smem>>) -> (i32, i32) {
    %c0_i32 = arith.constant 0 : i32
    %c0_i32_0 = arith.constant 0 : i32
    return %arg0, %c0_i32 : i32, i32
  }
  func.func @transform_1(%arg0: i32, %arg1: i32, %arg2: i32, %arg3: memref<4xi32, #tpu.memory_space<smem>>, %arg4: memref<4xi32, #tpu.memory_space<smem>>) -> (i32, i32, i32, i32) {
    %c4_i32 = arith.constant 4 : i32
    %0 = arith.muli %arg0, %c4_i32 : i32
    %1 = arith.addi %0, %arg1 : i32
    %2 = arith.index_cast %1 : i32 to index
    %3 = memref.load %arg3[%2] : memref<4xi32, #tpu.memory_space<smem>>
    %4 = arith.index_cast %1 : i32 to index
    %5 = memref.load %arg4[%4] : memref<4xi32, #tpu.memory_space<smem>>
    %6 = arith.muli %arg2, %3 : i32
    %c1_i32 = arith.constant 1 : i32
    %7 = arith.subi %c1_i32, %3 : i32
    %c0_i32 = arith.constant 0 : i32
    %8 = arith.muli %c0_i32, %7 : i32
    %9 = arith.addi %6, %8 : i32
    %c0_i32_0 = arith.constant 0 : i32
    %c0_i32_1 = arith.constant 0 : i32
    %c0_i32_2 = arith.constant 0 : i32
    return %5, %9, %c0_i32_0, %c0_i32_1 : i32, i32, i32, i32
  }
  func.func @transform_2(%arg0: i32, %arg1: i32, %arg2: i32, %arg3: memref<4xi32, #tpu.memory_space<smem>>, %arg4: memref<4xi32, #tpu.memory_space<smem>>) -> (i32, i32, i32, i32) {
    %c4_i32 = arith.constant 4 : i32
    %0 = arith.muli %arg0, %c4_i32 : i32
    %1 = arith.addi %0, %arg1 : i32
    %2 = arith.index_cast %1 : i32 to index
    %3 = memref.load %arg3[%2] : memref<4xi32, #tpu.memory_space<smem>>
    %4 = arith.index_cast %1 : i32 to index
    %5 = memref.load %arg4[%4] : memref<4xi32, #tpu.memory_space<smem>>
    %6 = arith.muli %arg2, %3 : i32
    %c1_i32 = arith.constant 1 : i32
    %7 = arith.subi %c1_i32, %3 : i32
    %c0_i32 = arith.constant 0 : i32
    %8 = arith.muli %c0_i32, %7 : i32
    %9 = arith.addi %6, %8 : i32
    %c0_i32_0 = arith.constant 0 : i32
    %c0_i32_1 = arith.constant 0 : i32
    %c0_i32_2 = arith.constant 0 : i32
    return %5, %9, %c0_i32_0, %c0_i32_1 : i32, i32, i32, i32
  }
  func.func @transform_3(%arg0: i32, %arg1: i32, %arg2: i32, %arg3: memref<4xi32, #tpu.memory_space<smem>>, %arg4: memref<4xi32, #tpu.memory_space<smem>>) -> (i32, i32) {
    %c0_i32 = arith.constant 0 : i32
    %c0_i32_0 = arith.constant 0 : i32
    return %arg0, %c0_i32 : i32, i32
  }
  func.func @transform_4(%arg0: i32, %arg1: i32, %arg2: i32, %arg3: memref<4xi32, #tpu.memory_space<smem>>, %arg4: memref<4xi32, #tpu.memory_space<smem>>) -> (i32, i32) {
    %c0_i32 = arith.constant 0 : i32
    %c0_i32_0 = arith.constant 0 : i32
    return %arg0, %c0_i32 : i32, i32
  }
}

</mosaic_0001>

<bundles_post_ra>
// kernel: tpu_custom_call.1
= control target key start
LH: loop header
LB: loop body
LE: loop exit
PB: predicated region body
PF: predicated region fallthrough
CT: control target
= control target key end

     0   :  { %s2414_s0 = inlined_call_operand.vmem [shape: s32[4], index: 0, kind: input, shape index: {}]   ;;  %s2415_s2 = inlined_call_operand.vmem [shape: f32[128,128], index: 2, kind: input, shape index: {}]   ;;  %s2416_s3 = inlined_call_operand.hbm [shape: f32[4,1,128,256], index: 3, kind: input, shape index: {}]   ;;  %s2417_s4 = inlined_call_operand.hbm [shape: f32[4,1,128,128], index: 4, kind: input, shape index: {}]   ;;  %s2418_s5 = inlined_call_operand.vmem [shape: f32[128,4], index: 5, kind: input, shape index: {}]   ;;  %s2419_s6 = inlined_call_operand.hbm [shape: f32[128,128], index: 6, kind: output, shape index: {}]   ;;  %s2420_s1 = inlined_call_operand.vmem [shape: s32[4], index: 1, kind: input, shape index: {}]  }
   0x1   :  { %2425 = sst [smem:[#allocation20_spill]] %s2416_s3  ;;  %s11_s23 = sshll.u32 %s2414_s0, 4  ;;  %s12_s23 = int_to_ptr.vmem [resolvable:$true] %s11_s23 }
   0x2   :  { %s15_s26 = sshll.u32 %s2420_s1, 4  ;;  %s1587_s27 = scalar_lea.vmem %s12_s23, 16  ;;  %s16_s26 = int_to_ptr.vmem [resolvable:$true] %s15_s26 }
   0x3   :  { %p1588_p0 = scmp.ne.s32.totalorder %s12_s23, %s1587_s27  ;;  %p1592_p1 = scmp.lt.s32.totalorder %s12_s23, %s12_s23 }
   0x4   :  { %p1593_p2 = scmp.lt.s32.totalorder %s1587_s27, %s1587_s27 }
   0x6   :  { %p1594_p3 = por %p1593_p2, %p1592_p1 }
   0x8   :  { %p1595_p4 = pnand %p1594_p3, %p1588_p0 }
   0xa   :  { %1598 = shalt.err (!%p1595_p4)  }
   0xb   :  { %s1783_s28 = smov [#allocation4]   ;;  %s1599_s29 = scalar_lea.vmem %s16_s26, 16 }
   0xc   :  { %14 = dma.vmem_to_smem %s12_s23, 16, %s1783_s28, [#allocation3] }
   0xd   :  { %p1600_p5 = scmp.ne.s32.totalorder %s16_s26, %s1599_s29  ;;  %p1604_p6 = scmp.lt.s32.totalorder %s16_s26, %s16_s26 }
   0xe   :  { %p1605_p7 = scmp.lt.s32.totalorder %s1599_s29, %s1599_s29 }
  0x10   :  { %p1606_p8 = por %p1605_p7, %p1604_p6 }
  0x12   :  { %p1607_p9 = pnand %p1606_p8, %p1600_p5 }
  0x14   :  { %1610 = shalt.err (!%p1607_p9)  }
  0x15   :  { %s1784_s0 = smov [#allocation5]  }
  0x16   :  { %18 = dma.vmem_to_smem %s16_s26, 16, %s1784_s0, [#allocation3] }
  0x17   :  { %1733 = dma.done.wait [#allocation3], 32 }
  0x18   :  { %1734 = vsyncadd [#allocation3], 4294967264 }
  0x19   :  { %20 = sfence }
  0x1a   :  { %21 = vsyncpa [#allocation7], 0 }
  0x1b   :  { %23 = vsyncpa [#allocation7 + $0x1], 0 }
  0x1c   :  { %24 = vsyncpa [#allocation10], 0 }
  0x1d   :  { %26 = vsyncpa [#allocation10 + $0x1], 0 }
  0x1e   :  { %27 = vsyncpa [#allocation8], 0  ;;  %s1837_s1 = smov 0   ;;  %s1839_s30 = smov 0  }
  0x1f   :  { %s1841_s7 = smov 0   ;;  %s1843_s8 = smov 0  }
  0x20   :  { %s1845_s9 = smov 0   ;;  %s1847_s10 = smov 0  }
  0x21   :  { %s1849_s11 = smov 0   ;;  %s1851_s12 = smov 0  }
  0x22   :  { %s1853_s13 = smov 0  }
  0x23 LB: > { %s48_s14 = sadd.s32 1, %s1777_s12  ;;  %s2421_s15 = sadd.s32 4294967295, %s1781_s13   ;;  %s1781_s13 = sphi %s1853_s13, %s33_s13   ;;  %s1777_s12 = sphi %s1851_s12, %s2452_s12   ;;  %s1773_s11 = sphi %s1849_s11, %s2451_s11   ;;  %s1769_s10 = sphi %s1847_s10, %s2450_s10   ;;  %s1765_s9 = sphi %s1845_s9, %s2449_s9   ;;  %s1761_s8 = sphi %s1843_s8, %s2448_s8   ;;  %s1757_s7 = sphi %s1841_s7, %s2447_s7   ;;  %s1753_s30 = sphi %s1839_s30, %s2446_s30   ;;  %s1749_s1 = sphi %s1837_s1, %s2445_s1  }
  0x24   : > { %p50_p10 = scmp.ge.s32.totalorder %s48_s14, 4  ;;  %s85_s16 = sld [smem:[#allocation5 + %s1777_s12]] }
  0x25   : > { %p104_p11 = scmp.ne.s32.totalorder %s1769_s10, %s1765_s9  ;;  %p2423_p12 = scmp.eq.s32.totalorder %s1781_s13, 0 }
  0x26   : > { %s2454_s14 = smov (%p50_p10, %s48_s14), 0  ;;  %p110_p13 = scmp.ne.s32.totalorder %s1765_s9, %s1761_s8 }
  0x27   : > { %s90_s17 = sld [smem:[#allocation5 + %s2454_s14]]  ;;  %p1892_p0 = scmp.eq.s32.totalorder %s2421_s15, 0 }
  0x28   : > { %s97_s19 = sadd.s32 1, %s1769_s10  ;;  %p1899_p1 = por %p2423_p12, %p104_p11 }
  0x29   : > { %p1905_p2 = por %p1892_p0, %p110_p13  ;;  %s1910_s22 = sld [smem:[#allocation5 + %s1777_s12]] }
  0x2a   : > { %s242_s23 = sand.u32 1, %s1769_s10   ;;  %p2422_p3 = scmp.lt.s32.totalorder %s1781_s13, 4 }
  0x2b   : > { %s2428_s21 = scalar_select %p1905_p2, 1, 0 }
  0x2c   : > { %s1226_s24 = sshll.u32 %s242_s23, 8  ;;  %p1918_p4 = pnand %p2422_p3, %p1899_p1 }
  0x2d   : > { %s92_s25 = ssub.s32 %s85_s16, %s90_s17  ;;  %s246_s27 = scalar_lea.vmem [#allocation6], %s1226_s24 }
  0x2e   : > { %p95_p5 = scmp.eq.s32.totalorder %s92_s25, 0  ;;  %s260_s28 = sshll.u32 %s246_s27, 4  ;;  %s1934_s28 = int_to_ptr.vmem [resolvable:$true] %s260_s28 }
  0x2f   : > { %s1414_s29 = scalar_select %p1899_p1, [#allocation5], [#allocation12] }
  0x30   : > { %s1925_s0 = scalar_select %p95_p5, %s1769_s10, %s97_s19  }
  0x31   : > { %s1415_s8 = scalar_select %p1899_p1, %s1777_s12, 0 }
  0x32   : > { %s2456_s29 = smov (!%p2422_p3, %s1414_s29), [#allocation14]  ;;  %p1232_p6 = scmp.ge.s32.totalorder %s1781_s13, 1 }
  0x33   : > { %s2458_s8 = smov (!%p2422_p3, %s1415_s8), 0  ;;  %p296_p7 = scmp.lt.s32.totalorder %s1781_s13, 5 }
  0x34   : > { %s250_s16 = sld [smem:[%s2456_s29 + %s2458_s8]]  ;;  %s1952_s29 = scalar_lea.sflag [#allocation7], %s242_s23 }
  0x35   : > { %p1938_p8 = pnand %p1232_p6, %p296_p7  ;;  %s1943_s24 = sld [smem:[#allocation5 + %s2454_s14]] }
  0x36   : > { %s2431_s3 = sld [smem:[#allocation20_spill]]  ;;  %p1613_p11 = pneg %p1918_p4 }
  0x37   : > { %s2430_s17 = scalar_select %p1938_p8, 1, 0 }
  0x3a   : > { %s1258_s19 = sshll.u32 %s250_s16, 12 }
  0x3c   : > { %s1948_s27 = scalar_lea.hbm %s2431_s3, %s1258_s19  ;;  %s1616_s19 = scalar_lea.hbm %s2431_s3, 16384 }
  0x3d   : > { %s1611_s8 = scalar_lea.hbm %s1948_s27, 4096  ;;  %p1617_p5 = scmp.lt.u32.totalorder %s1948_s27, %s2431_s3 }
  0x3e   : > { %p1612_p10 = scmp.ne.s32.totalorder %s1948_s27, %s1611_s8  ;;  %p1618_p6 = scmp.lt.u32.totalorder %s1616_s19, %s1611_s8 }
  0x3f   : > { %p1620_p3 = scmp.lt.u32.totalorder %s1611_s8, %s1948_s27 }
  0x40   : > { %p1614_p13 = pnand %p1613_p11, %p1612_p10  ;;  %p1619_p7 = por %p1618_p6, %p1617_p5 }
  0x42   : > { %p1615_p1 = pneg %p1614_p13  ;;  %p1621_p9 = por %p1620_p3, %p1619_p7 }
  0x44   : > { %p1622_p12 = pnand %p1621_p9, %p1615_p1 }
  0x46   : > { %1625 = shalt.err (!%p1622_p12)
}
  0x47   : > { %s1626_s23 = scalar_lea.vmem %s1934_s28, 4096  ;;  %s1785_s15 = smov [#allocation6]  }
  0x48   : > { %p1627_p10 = scmp.ne.s32.totalorder %s1934_s28, %s1626_s23  ;;  %s1631_s16 = sshll.u32 %s1785_s15, 4  ;;  %s1632_s16 = int_to_ptr.vmem [resolvable:$false] %s1631_s16 }
  0x49   : > { %s1633_s20 = scalar_lea.vmem %s1632_s16, 8192  ;;  %p1634_p8 = scmp.lt.s32.totalorder %s1934_s28, %s1632_s16 }
  0x4a   : > { %p1629_p13 = pnand %p1627_p10, %p1613_p11  ;;  %p1635_p5 = scmp.lt.s32.totalorder %s1633_s20, %s1626_s23 }
  0x4c   : > { %p1630_p2 = pneg %p1629_p13  ;;  %p1636_p6 = por %p1635_p5, %p1634_p8 }
  0x4e   : > { %p1637_p3 = pnand %p1636_p6, %p1630_p2 }
  0x50   : > { %1640 = shalt.err (!%p1637_p3)
}
  0x51   : > { %s1786_s8 = smov 256   ;;  %s1787_s19 = smov 16  }
  0x52   : > { %1431 = dma.hbm_to_vmem [thread:$0]  (!%p1918_p4), %s1948_s27, 4096, %s1934_s28, %s1952_s29, %s1786_s8, %s1786_s8, %s1787_s19  }
  0x53   : > { %p148_p12 = scmp.ne.s32.totalorder %s1753_s30, %s1749_s1  ;;  %s135_s25 = sadd.s32 1, %s1757_s7 }
  0x54   : > { %p2432_p2 = scmp.eq.s32.totalorder %s1781_s13, 0  ;;  %p2433_p8 = scmp.ne.s32.totalorder %s1757_s7, %s1753_s30 }
  0x55   : > { %s130_s23 = ssub.s32 %s1910_s22, %s1943_s24  ;;  %p1992_p11 = por %p148_p12, %p1892_p0 }
  0x56   : > { %p144_p9 = por %p2433_p8, %p2432_p2  ;;  %p133_p1 = scmp.eq.s32.totalorder %s130_s23, 0 }
  0x57   : > { %s270_s16 = sand.u32 1, %s1757_s7   ;;  %p2435_p7 = scmp.lt.s32.totalorder %s1781_s13, 4 }
  0x58   : > { %s2004_s26 = scalar_select %p133_p1, %s1757_s7, %s135_s25  }
  0x59   : > { %p1999_p10 = pnand %p2435_p7, %p144_p9  ;;  %s1229_s1 = sshll.u32 %s270_s16, 7 }
  0x5a   : > { %s1417_s28 = scalar_select %p144_p9, [#allocation5], [#allocation13] }
  0x5b   : > { %s1418_s27 = scalar_select %p144_p9, %s1777_s12, 0 }
  0x5c   : > { %p2437_p4 = pmov %p2435_p7  ;;  %s274_s22 = scalar_lea.vmem [#allocation9], %s1229_s1 }
  0x5d   : > { %s288_s24 = sshll.u32 %s274_s22, 4  ;;  %s2018_s25 = scalar_lea.sflag [#allocation10], %s270_s16  ;;  %s2011_s24 = int_to_ptr.vmem [resolvable:$true] %s288_s24 }
  0x5e   : > { %s2460_s28 = smov (!%p2437_p4, %s1417_s28), [#allocation15]  ;;  %p2438_p0 = pmov %p2437_p4 }
  0x5f   : > { %p1643_p5 = pneg %p1999_p10 }
  0x60   : > { %s2462_s27 = smov (!%p2438_p0, %s1418_s27), 0 }
  0x61   : > { %s278_s18 = sld [smem:[%s2460_s28 + %s2462_s27]]  ;;  %s1646_s27 = scalar_lea.hbm %s2417_s4, 8192 }
  0x67   : > { %s1259_s29 = sshll.u32 %s278_s18, 11 }
  0x68   : > { %s2016_s23 = scalar_lea.hbm %s2417_s4, %s1259_s29 }
  0x69   : > { %s1641_s3 = scalar_lea.hbm %s2016_s23, 2048  ;;  %p1647_p12 = scmp.lt.u32.totalorder %s2016_s23, %s2417_s4 }
  0x6a   : > { %p1642_p13 = scmp.ne.s32.totalorder %s2016_s23, %s1641_s3  ;;  %p1648_p2 = scmp.lt.u32.totalorder %s1646_s27, %s1641_s3 }
  0x6b   : > { %p1650_p9 = scmp.lt.u32.totalorder %s1641_s3, %s2016_s23 }
  0x6c   : > { %p1644_p6 = pnand %p1643_p5, %p1642_p13  ;;  %p1649_p8 = por %p1648_p2, %p1647_p12 }
  0x6e   : > { %p1645_p3 = pneg %p1644_p6  ;;  %p1651_p1 = por %p1650_p9, %p1649_p8 }
  0x70   : > { %p1652_p7 = pnand %p1651_p1, %p1645_p3 }
  0x72   : > { %1655 = shalt.err (!%p1652_p7)
}
  0x73   : > { %s1656_s16 = scalar_lea.vmem %s2011_s24, 2048  ;;  %s1788_s29 = smov [#allocation9]  }
  0x74   : > { %p1657_p4 = scmp.ne.s32.totalorder %s2011_s24, %s1656_s16  ;;  %s1661_s8 = sshll.u32 %s1788_s29, 4  ;;  %s1662_s8 = int_to_ptr.vmem [resolvable:$false] %s1661_s8 }
  0x75   : > { %s1663_s19 = scalar_lea.vmem %s1662_s8, 4096  ;;  %p1664_p6 = scmp.lt.s32.totalorder %s2011_s24, %s1662_s8 }
  0x76   : > { %p1659_p0 = pnand %p1657_p4, %p1643_p5  ;;  %p1665_p12 = scmp.lt.s32.totalorder %s1663_s19, %s1656_s16 }
  0x78   : > { %p1660_p13 = pneg %p1659_p0  ;;  %p1666_p2 = por %p1665_p12, %p1664_p6 }
  0x7a   : > { %p1667_p8 = pnand %p1666_p2, %p1660_p13 }
  0x7c   : > { %1670 = shalt.err (!%p1667_p8)
}
  0x7d   : > { %s1789_s3 = smov 128   ;;  %s1790_s1 = smov 8  }
  0x7e   : > { %1436 = dma.hbm_to_vmem [thread:$0]  (!%p1999_p10), %s2016_s23, 2048, %s2011_s24, %s2018_s25, %s1789_s3, %s1789_s3, %s1790_s1  }
  0x7f   : > { %p2439_p5 = scmp.ne.s32.totalorder %s2430_s17, 0 }
  0x80   : > { %s302_s28 = sand.u32 (!%p2439_p5), 1, %s1765_s9   ;;  %p2440_p3 = scmp.ne.s32.totalorder (!%p2439_p5), %s2428_s21, 0 }
  0x81   : > { %300 = sbr.rel (%p2439_p5) target bundleno = 749 (0x2ed), region = 36  ;;  %s1233_s27 = sshll.u32 (!%p2439_p5), %s302_s28, 8 }
  0x82   : > { %s303_s18 = scalar_lea.sflag (!%p2439_p5), [#allocation7], %s302_s28  ;;  %s2049_s22 = scalar_lea.vmem (!%p2439_p5), [#allocation6], %s1233_s27 }
  0x88   : > { %1736 = dma.done.wait (%p2440_p3), %s303_s18, 4096  }
  0x89   : > { %1738 = vsyncadd (%p2440_p3), %s303_s18, 4294963200  ;;  %s311_s16 = sand.u32 1, %s1753_s30  }
  0x8a   : > { %s1234_s20 = sshll.u32 %s311_s16, 7  ;;  %s312_s24 = scalar_lea.sflag [#allocation10], %s311_s16 }
  0x8b   : > { %s2056_s23 = scalar_lea.vmem [#allocation9], %s1234_s20 }
  0x8c   : > { %1740 = dma.done.wait (%p1992_p11), %s312_s24, 2048  }
  0x8d   : > { %1742 = vsyncadd (%p1992_p11), %s312_s24, 4294965248  ;;  %p373_p10 = scmp.eq.s32.totalorder %s1773_s11, 0 }
  0x8e   : > { %v1791_v0 = vmov (%p373_p10), 0.0  }
  0x8f   : > { %378 = sbr.rel (!%p373_p10) target bundleno = 151 (0x97), region = 48  ;;  %379 = vst [vmem:[#allocation2] sm:$0xff] (%p373_p10), %v1791_v0  ;;  %380 = vst [vmem:[#allocation2 + $0x8] sm:$0xff] (%p373_p10), %v1791_v0 }
  0x90   : > { %381 = vst [vmem:[#allocation2 + $0x10] sm:$0xff] (%p373_p10), %v1791_v0  ;;  %382 = vst [vmem:[#allocation2 + $0x18] sm:$0xff] (%p373_p10), %v1791_v0 }
  0x91   : > { %383 = vst [vmem:[#allocation2 + $0x20] sm:$0xff] (%p373_p10), %v1791_v0  ;;  %384 = vst [vmem:[#allocation2 + $0x28] sm:$0xff] (%p373_p10), %v1791_v0 }
  0x92   : > { %385 = vst [vmem:[#allocation2 + $0x30] sm:$0xff] (%p373_p10), %v1791_v0  ;;  %386 = vst [vmem:[#allocation2 + $0x38] sm:$0xff] (%p373_p10), %v1791_v0 }
  0x93   : > { %387 = vst [vmem:[#allocation2 + $0x40] sm:$0xff] (%p373_p10), %v1791_v0  ;;  %388 = vst [vmem:[#allocation2 + $0x48] sm:$0xff] (%p373_p10), %v1791_v0 }
  0x94   : > { %389 = vst [vmem:[#allocation2 + $0x50] sm:$0xff] (%p373_p10), %v1791_v0  ;;  %390 = vst [vmem:[#allocation2 + $0x58] sm:$0xff] (%p373_p10), %v1791_v0 }
  0x95   : > { %391 = vst [vmem:[#allocation2 + $0x60] sm:$0xff] (%p373_p10), %v1791_v0  ;;  %392 = vst [vmem:[#allocation2 + $0x68] sm:$0xff] (%p373_p10), %v1791_v0 }
  0x96   : > { %393 = vst [vmem:[#allocation2 + $0x70] sm:$0xff] %v1791_v0  ;;  %394 = vst [vmem:[#allocation2 + $0x78] sm:$0xff] %v1791_v0 }
  0x97 PF: > { %s397_s21 = sld [smem:[#allocation4 + %s1773_s11]] }
  0x9d   : > { %p1236_p11 = scmp.eq.s32.totalorder %s397_s21, 0 }
  0x9e   : > { %v419_v1 = vld [vmem:[%s2049_s22 + $0x8] sm:$0xff] (!%p1236_p11)  ;;  %v421_v2 = vld [vmem:[%s2049_s22 + $0x18] sm:$0xff] (!%p1236_p11)  ;;  %v418_v3 = vld [vmem:[%s2049_s22] sm:$0xff] (!%p1236_p11)  ;;  %v1792_v8 = vmov (!%p1236_p11), 0.0   ;;  %v771_v21 = vlaneseq (!%p1236_p11)  ;;  %v773_v29 = vstv (!%p1236_p11), %s1773_s11  ;;  %vm791_vm1 = vcmask (!%p1236_p11), 31744  }
  0x9f   : > { %401 = sbr.rel (%p1236_p11) target bundleno = 713 (0x2c9), region = 52  ;;  %v1350_v4 = vpack.c.bf16 (!%p1236_p11), %v421_v2, %v419_v1  ;;  %v420_v5 = vld [vmem:[%s2049_s22 + $0x10] sm:$0xff] (!%p1236_p11)  ;;  %v423_v6 = vld [vmem:[%s2049_s22 + $0x28] sm:$0xff] (!%p1236_p11)  ;;  %v425_v7 = vld [vmem:[%s2049_s22 + $0x38] sm:$0xff] (!%p1236_p11)  ;;  %530 = vmatprep.mubr.f32.mxu0 (!%p1236_p11), %v1792_v8 }
  0xa0   : > { %v1352_v9 = vpack.c.bf16 (!%p1236_p11), %v420_v5, %v418_v3  ;;  %v1354_v10 = vpack.c.bf16 (!%p1236_p11), %v425_v7, %v423_v6  ;;  %v422_v11 = vld [vmem:[%s2049_s22 + $0x20] sm:$0xff] (!%p1236_p11)  ;;  %v424_v12 = vld [vmem:[%s2049_s22 + $0x30] sm:$0xff] (!%p1236_p11)  ;;  %v427_v13 = vld [vmem:[%s2049_s22 + $0x48] sm:$0xff] (!%p1236_p11)  ;;  %v772_v28 = vand.u32 (!%p1236_p11), 127, %v771_v21 }
  0xa1   : > { %1351 = vmatprep.subr.bf16.mxu0 (!%p1236_p11), %v1350_v4  ;;  %v429_v14 = vld [vmem:[%s2049_s22 + $0x58] sm:$0xff] (!%p1236_p11)  ;;  %v1356_v15 = vpack.c.bf16 (!%p1236_p11), %v424_v12, %v422_v11  ;;  %v426_v17 = vld [vmem:[%s2049_s22 + $0x40] sm:$0xff] (!%p1236_p11)  ;;  %v428_v18 = vld [vmem:[%s2049_s22 + $0x50] sm:$0xff] (!%p1236_p11) }
  0xa2   : > { %1353 = vmatpush1.bf16.msra.mxu0 (!%p1236_p11), %v1352_v9  ;;  %v1358_v16 = vpack.c.bf16 (!%p1236_p11), %v429_v14, %v427_v13  ;;  %v431_v19 = vld [vmem:[%s2049_s22 + $0x68] sm:$0xff] (!%p1236_p11)  ;;  %v433_v20 = vld [vmem:[%s2049_s22 + $0x78] sm:$0xff] (!%p1236_p11)  ;;  %v1360_v22 = vpack.c.bf16 (!%p1236_p11), %v428_v18, %v426_v17  ;;  %v430_v24 = vld [vmem:[%s2049_s22 + $0x60] sm:$0xff] (!%p1236_p11)  ;;  %vm2088_vm0 = vcmp.eq.s32.totalorder (!%p1236_p11), %v772_v28, %v773_v29 }
  0xa3   : > { %1355 = vmatprep.subr.bf16.mxu0 (!%p1236_p11), %v1354_v10  ;;  %v1362_v23 = vpack.c.bf16 (!%p1236_p11), %v433_v20, %v431_v19  ;;  %v432_v25 = vld [vmem:[%s2049_s22 + $0x70] sm:$0xff] (!%p1236_p11)  ;;  %v435_v26 = vld [vmem:[%s2049_s22 + $0x88] sm:$0xff] (!%p1236_p11)  ;;  %v437_v27 = vld [vmem:[%s2049_s22 + $0x98] sm:$0xff] (!%p1236_p11) }
  0xa4   : > { %v1364_v30 = vpack.c.bf16 (!%p1236_p11), %v432_v25, %v430_v24  ;;  %v1366_v31 = vpack.c.bf16 (!%p1236_p11), %v437_v27, %v435_v26  ;;  %v434_v32 = vld [vmem:[%s2049_s22 + $0x80] sm:$0xff] (!%p1236_p11)  ;;  %v436_v33 = vld [vmem:[%s2049_s22 + $0x90] sm:$0xff] (!%p1236_p11)  ;;  %v439_v34 = vld [vmem:[%s2049_s22 + $0xa8] sm:$0xff] (!%p1236_p11) }
  0xa5   : > { %v441_v35 = vld [vmem:[%s2049_s22 + $0xb8] sm:$0xff] (!%p1236_p11)  ;;  %v438_v37 = vld [vmem:[%s2049_s22 + $0xa0] sm:$0xff] (!%p1236_p11)  ;;  %v1368_v38 = vpack.c.bf16 (!%p1236_p11), %v436_v33, %v434_v32  ;;  %v756_v40 = vld [vmem:[%s2418_s5 + $0x8] sm:$0xff] (!%p1236_p11) }
  0xa6   : > { %1357 = vmatpush1.bf16.msra.mxu0 %v1356_v15  ;;  %v755_v39 = vld [vmem:[%s2418_s5] sm:$0xff]  ;;  %v757_v41 = vld [vmem:[%s2418_s5 + $0x10] sm:$0xff]  ;;  %v1370_v42 = vpack.c.bf16 %v441_v35, %v439_v34  ;;  %v443_v44 = vld [vmem:[%s2049_s22 + $0xc8] sm:$0xff]  ;;  %v776_v46 = vsel %vm2088_vm0, %v756_v40, 0.0 }
  0xa7   : > { %1359 = vmatprep.subr.bf16.mxu0 %v1358_v16  ;;  %v440_v43 = vld [vmem:[%s2049_s22 + $0xb0] sm:$0xff]  ;;  %v775_v45 = vsel %vm2088_vm0, %v755_v39, 0.0  ;;  %v777_v47 = vsel %vm2088_vm0, %v757_v41, 0.0  ;;  %v758_v48 = vld [vmem:[%s2418_s5 + $0x18] sm:$0xff]  ;;  %v759_v53 = vld [vmem:[%s2418_s5 + $0x20] sm:$0xff]  ;;  %v795_v56 = vsel %vm791_vm1, %v776_v46, 0.0 }
  0xa8   : > { %v445_v49 = vld [vmem:[%s2049_s22 + $0xd8] sm:$0xff]  ;;  %v792_v50 = vsel %vm791_vm1, %v775_v45, 0.0  ;;  %v798_v51 = vsel %vm791_vm1, %v777_v47, 0.0  ;;  %v778_v52 = vsel %vm2088_vm0, %v758_v48, 0.0  ;;  %v760_v54 = vld [vmem:[%s2418_s5 + $0x28] sm:$0xff]  ;;  %v1372_v55 = vpack.c.bf16 %v440_v43, %v438_v37  ;;  %v442_v59 = vld [vmem:[%s2049_s22 + $0xc0] sm:$0xff] }
  0xa9   : > { %793 = vadd.xlane.f32.xlu0 %v792_v50  ;;  %799 = vadd.xlane.f32.xlu1 %v798_v51  ;;  %v801_v57 = vsel %vm791_vm1, %v778_v52, 0.0  ;;  %v1374_v58 = vpack.c.bf16 %v445_v49, %v443_v44  ;;  %v444_v60 = vld [vmem:[%s2049_s22 + $0xd0] sm:$0xff]  ;;  %v447_v61 = vld [vmem:[%s2049_s22 + $0xe8] sm:$0xff]  ;;  %v779_v62 = vsel %vm2088_vm0, %v759_v53, 0.0  ;;  %v780_v63 = vsel %vm2088_vm0, %v760_v54, 0.0  ;;  %v449_v0 = vld [vmem:[%s2049_s22 + $0xf8] sm:$0xff] }
  0xaa   : > { %1361 = vmatpush1.bf16.msra.mxu0 %v1360_v22  ;;  %v761_v1 = vld [vmem:[%s2418_s5 + $0x30] sm:$0xff]  ;;  %v762_v2 = vld [vmem:[%s2418_s5 + $0x38] sm:$0xff]  ;;  %v1376_v3 = vpack.c.bf16 %v444_v60, %v442_v59  ;;  %v804_v4 = vsel %vm791_vm1, %v779_v62, 0.0  ;;  %v807_v5 = vsel %vm791_vm1, %v780_v63, 0.0  ;;  %v1378_v6 = vpack.c.bf16 %v449_v0, %v447_v61  ;;  %v446_v7 = vld [vmem:[%s2049_s22 + $0xe0] sm:$0xff] }
  0xab   : > { %1363 = vmatprep.subr.bf16.mxu0 %v1362_v23  ;;  %v448_v9 = vld [vmem:[%s2049_s22 + $0xf0] sm:$0xff]  ;;  %v781_v10 = vsel %vm2088_vm0, %v761_v1, 0.0  ;;  %v782_v11 = vsel %vm2088_vm0, %v762_v2, 0.0  ;;  %v763_v12 = vld [vmem:[%s2418_s5 + $0x40] sm:$0xff]  ;;  %v764_v13 = vld [vmem:[%s2418_s5 + $0x48] sm:$0xff] }
  0xac   : > { %v1380_v14 = vpack.c.bf16 %v448_v9, %v446_v7  ;;  %v810_v15 = vsel %vm791_vm1, %v781_v10, 0.0  ;;  %v813_v16 = vsel %vm791_vm1, %v782_v11, 0.0  ;;  %v783_v17 = vsel %vm2088_vm0, %v763_v12, 0.0  ;;  %v765_v19 = vld [vmem:[%s2418_s5 + $0x50] sm:$0xff]  ;;  %v766_v20 = vld [vmem:[%s2418_s5 + $0x58] sm:$0xff]  ;;  %v402_v21 = vld [vmem:[%s2415_s2] sm:$0xff] }
  0xad   : > { %796 = vadd.xlane.f32.xlu0 %v795_v56  ;;  %802 = vadd.xlane.f32.xlu1 %v801_v57  ;;  %v784_v18 = vsel %vm2088_vm0, %v764_v13, 0.0  ;;  %v816_v22 = vsel %vm791_vm1, %v783_v17, 0.0  ;;  %v785_v24 = vsel %vm2088_vm0, %v765_v19, 0.0  ;;  %v786_v25 = vsel %vm2088_vm0, %v766_v20, 0.0  ;;  %v767_v26 = vld [vmem:[%s2418_s5 + $0x60] sm:$0xff]  ;;  %v768_v27 = vld [vmem:[%s2418_s5 + $0x68] sm:$0xff] }
  0xae   : > { %1365 = vmatpush1.bf16.msra.mxu0 %v1364_v30  ;;  %v819_v23 = vsel %vm791_vm1, %v784_v18, 0.0  ;;  %v403_v28 = vld [vmem:[%s2415_s2 + $0x8] sm:$0xff]  ;;  %v822_v29 = vsel %vm791_vm1, %v785_v24, 0.0  ;;  %v825_v30 = vsel %vm791_vm1, %v786_v25, 0.0  ;;  %v788_v32 = vsel %vm2088_vm0, %v768_v27, 0.0  ;;  %v769_v33 = vld [vmem:[%s2418_s5 + $0x70] sm:$0xff] }
  0xaf   : > { %1367 = vmatprep.subr.bf16.mxu0 %v1366_v31  ;;  %v787_v31 = vsel %vm2088_vm0, %v767_v26, 0.0  ;;  %v770_v34 = vld [vmem:[%s2418_s5 + $0x78] sm:$0xff]  ;;  %v404_v35 = vld [vmem:[%s2415_s2 + $0x10] sm:$0xff]  ;;  %v789_v39 = vsel %vm2088_vm0, %v769_v33, 0.0  ;;  %v406_v36 = vld [vmem:[%s2415_s2 + $0x20] sm:$0xff] }
  0xb0   : > { %v828_v37 = vsel %vm791_vm1, %v787_v31, 0.0  ;;  %v790_v40 = vsel %vm2088_vm0, %v770_v34, 0.0  ;;  %v405_v41 = vld [vmem:[%s2415_s2 + $0x18] sm:$0xff]  ;;  %v407_v44 = vld [vmem:[%s2415_s2 + $0x28] sm:$0xff]  ;;  %v408_v45 = vld [vmem:[%s2415_s2 + $0x30] sm:$0xff] }
  0xb1   : > { %805 = vadd.xlane.f32.xlu0 %v804_v4  ;;  %808 = vadd.xlane.f32.xlu1 %v807_v5  ;;  %v837_v43 = vsel %vm791_vm1, %v790_v40, 0.0  ;;  %v409_v46 = vld [vmem:[%s2415_s2 + $0x38] sm:$0xff]  ;;  %v410_v47 = vld [vmem:[%s2415_s2 + $0x40] sm:$0xff]  ;;  %v411_v48 = vld [vmem:[%s2415_s2 + $0x48] sm:$0xff] }
  0xb2   : > { %1369 = vmatpush1.bf16.msra.mxu0 %v1368_v38  ;;  %v831_v38 = vsel %vm791_vm1, %v788_v32, 0.0  ;;  %v412_v49 = vld [vmem:[%s2415_s2 + $0x50] sm:$0xff]  ;;  %v413_v50 = vld [vmem:[%s2415_s2 + $0x58] sm:$0xff]  ;;  %v414_v51 = vld [vmem:[%s2415_s2 + $0x60] sm:$0xff] }
  0xb3   : > { %1371 = vmatprep.subr.bf16.mxu0 %v1370_v42  ;;  %v834_v42 = vsel %vm791_vm1, %v789_v39, 0.0  ;;  %v415_v52 = vld [vmem:[%s2415_s2 + $0x68] sm:$0xff]  ;;  %v416_v53 = vld [vmem:[%s2415_s2 + $0x70] sm:$0xff]  ;;  %v417_v54 = vld [vmem:[%s2415_s2 + $0x78] sm:$0xff] }
  0xb4   : > { %v451_v56 = vld [vmem:[%s2056_s23 + $0x8] sm:$0xff]  ;;  %v453_v59 = vld [vmem:[%s2056_s23 + $0x18] sm:$0xff]  ;;  %v456_v63 = vld [vmem:[%s2056_s23 + $0x30] sm:$0xff] }
  0xb5   : > { %811 = vadd.xlane.f32.xlu0 %v810_v15  ;;  %814 = vadd.xlane.f32.xlu1 %v813_v16  ;;  %v455_v61 = vld [vmem:[%s2056_s23 + $0x28] sm:$0xff]  ;;  %v457_v0 = vld [vmem:[%s2056_s23 + $0x38] sm:$0xff]  ;;  %v458_v2 = vld [vmem:[%s2056_s23 + $0x40] sm:$0xff] }
  0xb6   : > { %1373 = vmatpush1.bf16.msra.mxu0 %v1372_v55  ;;  %v450_v55 = vld [vmem:[%s2056_s23] sm:$0xff]  ;;  %v1394_v1 = vpack.c.bf16 %v457_v0, %v456_v63  ;;  %v460_v5 = vld [vmem:[%s2056_s23 + $0x50] sm:$0xff]  ;;  %v463_v10 = vld [vmem:[%s2056_s23 + $0x68] sm:$0xff] }
  0xb7   : > { %1375 = vmatprep.subr.bf16.mxu0 %v1374_v58  ;;  %v1382_v57 = vpack.c.bf16 %v451_v56, %v450_v55  ;;  %v452_v58 = vld [vmem:[%s2056_s23 + $0x10] sm:$0xff]  ;;  %v462_v9 = vld [vmem:[%s2056_s23 + $0x60] sm:$0xff]  ;;  %v465_v13 = vld [vmem:[%s2056_s23 + $0x78] sm:$0xff] }
  0xb8   : > { %v1386_v60 = vpack.c.bf16 %v453_v59, %v452_v58  ;;  %v1406_v11 = vpack.c.bf16 %v463_v10, %v462_v9  ;;  %v464_v12 = vld [vmem:[%s2056_s23 + $0x70] sm:$0xff] }
  0xb9   : > { %817 = vadd.xlane.f32.xlu0 %v816_v22  ;;  %820 = vadd.xlane.f32.xlu1 %v819_v23 }
  0xba   : > { %1377 = vmatpush1.bf16.msra.mxu0 %v1376_v3  ;;  %1383 = vmatprep.subr.bf16.mxu1 %v1382_v57  ;;  %v459_v3 = vld [vmem:[%s2056_s23 + $0x48] sm:$0xff] }
  0xbb   : > { %1379 = vmatprep.subr.bf16.mxu0 %v1378_v6  ;;  %1385 = vmatpush3.bf16.msra.mxu1 %v1382_v57  ;;  %v1398_v4 = vpack.c.bf16 %v459_v3, %v458_v2  ;;  %v461_v6 = vld [vmem:[%s2056_s23 + $0x58] sm:$0xff] }
  0xbc   : > { %1387 = vmatprep.subr.bf16.mxu1 %v1386_v60  ;;  %v1402_v7 = vpack.c.bf16 %v461_v6, %v460_v5 }
  0xbd   : > { %823 = vadd.xlane.f32.xlu0 %v822_v29  ;;  %826 = vadd.xlane.f32.xlu1 %v825_v30 }
  0xbe   : > { %1381 = vmatpush1.bf16.msra.mxu0 %v1380_v14  ;;  %v1410_v14 = vpack.c.bf16 %v465_v13, %v464_v12 }
  0xbf   : > { %1389 = vmatpush3.bf16.msra.mxu1 %v1386_v60 }
  0xc1   : > { %531 = vmatmul.mubr.f32.vlgmr.msra.gmra.mrb[0].mxu0 %v402_v21  ;;  %829 = vadd.xlane.f32.xlu0 %v828_v37 }
  0xc2   : > { %536 = vmatprep.mubr.f32.mxu0 %v1792_v8  ;;  %832 = vadd.xlane.f32.xlu1 %v831_v38 }
  0xc5   : > { %537 = vmatmul.mubr.f32.gmra.mrb[2].mxu0 %v403_v28  ;;  %835 = vadd.xlane.f32.xlu0 %v834_v42 }
  0xc6   : > { %542 = vmatprep.mubr.f32.mxu0 %v1792_v8  ;;  %838 = vadd.xlane.f32.xlu1 %v837_v43 }
  0xc9   : > { %543 = vmatmul.mubr.f32.gmra.mrb[4].mxu0 %v404_v35 }
  0xca   : > { %548 = vmatprep.mubr.f32.mxu0 %v1792_v8 }
  0xcd   : > { %549 = vmatmul.mubr.f32.gmra.mrb[6].mxu0 %v405_v41 }
  0xce   : > { %554 = vmatprep.mubr.f32.mxu0 %v1792_v8 }
  0xd1   : > { %555 = vmatmul.mubr.f32.gmra.mrb[8].mxu0 %v406_v36 }
  0xd2   : > { %560 = vmatprep.mubr.f32.mxu0 %v1792_v8 }
  0xd5   : > { %561 = vmatmul.mubr.f32.gmra.mrb[10].mxu0 %v407_v44 }
  0xd6   : > { %566 = vmatprep.mubr.f32.mxu0 %v1792_v8 }
  0xd9   : > { %567 = vmatmul.mubr.f32.gmra.mrb[12].mxu0 %v408_v45 }
  0xda   : > { %572 = vmatprep.mubr.f32.mxu0 %v1792_v8 }
  0xdd   : > { %573 = vmatmul.mubr.f32.gmra.mrb[14].mxu0 %v409_v46 }
  0xde   : > { %578 = vmatprep.mubr.f32.mxu0 %v1792_v8 }
  0xe1   : > { %579 = vmatmul.mubr.f32.gmra.mrb[16].mxu0 %v410_v47 }
  0xe2   : > { %584 = vmatprep.mubr.f32.mxu0 %v1792_v8 }
  0xe5   : > { %585 = vmatmul.mubr.f32.gmra.mrb[18].mxu0 %v411_v48 }
  0xe6   : > { %590 = vmatprep.mubr.f32.mxu0 %v1792_v8 }
  0xe9   : > { %591 = vmatmul.mubr.f32.gmra.mrb[20].mxu0 %v412_v49 }
  0xea   : > { %596 = vmatprep.mubr.f32.mxu0 %v1792_v8 }
  0xed   : > { %597 = vmatmul.mubr.f32.gmra.mrb[22].mxu0 %v413_v50 }
  0xee   : > { %602 = vmatprep.mubr.f32.mxu0 %v1792_v8 }
  0xf1   : > { %603 = vmatmul.mubr.f32.gmra.mrb[24].mxu0 %v414_v51 }
  0xf2   : > { %608 = vmatprep.mubr.f32.mxu0 %v1792_v8 }
  0xf5   : > { %609 = vmatmul.mubr.f32.gmra.mrb[26].mxu0 %v415_v52 }
  0xf6   : > { %614 = vmatprep.mubr.f32.mxu0 %v1792_v8 }
  0xf9   : > { %615 = vmatmul.mubr.f32.gmra.mrb[28].mxu0 %v416_v53 }
  0xfa   : > { %620 = vmatprep.mubr.f32.mxu0 %v1792_v8  ;;  %v454_v8 = vld [vmem:[%s2056_s23 + $0x20] sm:$0xff] }
  0xfb   : > { %v1390_v62 = vpack.c.bf16 %v455_v61, %v454_v8 }
  0xfd   : > { %621 = vmatmul.mubr.f32.gmra.mrb[30].mxu0 %v417_v54  ;;  %1391 = vmatprep.subr.bf16.mxu1 %v1390_v62 }
  0xfe   : > { %1393 = vmatpush3.bf16.msra.mxu1 %v1390_v62 }
  0xff   : > { %1395 = vmatprep.subr.bf16.mxu1 %v1394_v1 }
 0x102   : > { %1397 = vmatpush3.bf16.msra.mxu1 %v1394_v1 }
 0x103   : > { %1399 = vmatprep.subr.bf16.mxu1 %v1398_v4 }
 0x106   : > { %1401 = vmatpush3.bf16.msra.mxu1 %v1398_v4 }
 0x107   : > { %1403 = vmatprep.subr.bf16.mxu1 %v1402_v7 }
 0x10a   : > { %1405 = vmatpush3.bf16.msra.mxu1 %v1402_v7 }
 0x10b   : > { %1407 = vmatprep.subr.bf16.mxu1 %v1406_v11 }
 0x10e   : > { %1409 = vmatpush3.bf16.msra.mxu1 %v1406_v11 }
 0x10f   : > { %1411 = vmatprep.subr.bf16.mxu1 %v1410_v14 }
 0x112   : > { %1413 = vmatpush3.bf16.msra.mxu1 %v1410_v14 }
 0x136   : > { %v794_v45 = vpop.xlane.xlu0 %793  ;;  %v800_v63 = vpop.xlane.xlu1 %799 }
 0x13a   : > { %v797_v57 = vpop.xlane.xlu0 %796  ;;  %v803_v13 = vpop.xlane.xlu1 %802 }
 0x194   : > { %v532_v15 = vpop.f32.mrb[0].mxu0 }
 0x195   : > { %v1237_v16 = vmul.f32 -1.442695, %v532_v15  ;;  %v534_v17 = vpop.f32.mrb[1].mxu0 }
 0x197   : > { %1523 = vpow2.f32 %v1237_v16 }
 0x198   : > { %v538_v18 = vpop.f32.mrb[2].mxu0 }
 0x199   : > { %v1238_v19 = vmul.f32 -1.442695, %v538_v18  ;;  %v540_v20 = vpop.f32.mrb[3].mxu0 }
 0x19b   : > { %1525 = vpow2.f32 %v1238_v19 }
 0x19c   : > { %v544_v21 = vpop.f32.mrb[4].mxu0 }
 0x19d   : > { %v1239_v22 = vmul.f32 -1.442695, %v544_v21  ;;  %v546_v23 = vpop.f32.mrb[5].mxu0 }
 0x19f   : > { %1527 = vpow2.f32 %v1239_v22 }
 0x1a0   : > { %v2277_v24 = vpop.f32.mrb[6].mxu0 }
 0x1a1   : > { %v1524_v25 = vpop.eup %1523  ;;  %v1240_v26 = vmul.f32 -1.442695, %v2277_v24  ;;  %v2280_v27 = vpop.f32.mrb[7].mxu0 }
 0x1a2   : > { %v675_v28 = vadd.f32 1.0, %v1524_v25 }
 0x1a3   : > { %1529 = vpow2.f32 %v1240_v26 }
 0x1a4   : > { %1531 = vrcp.f32 %v675_v28  ;;  %v2282_v29 = vpop.f32.mrb[8].mxu0 }
 0x1a5   : > { %v1526_v30 = vpop.eup %1525  ;;  %v1241_v31 = vmul.f32 -1.442695, %v2282_v29  ;;  %v2285_v32 = vpop.f32.mrb[9].mxu0 }
 0x1a6   : > { %v676_v33 = vadd.f32 1.0, %v1526_v30 }
 0x1a7   : > { %1533 = vpow2.f32 %v1241_v31 }
 0x1a8   : > { %1535 = vrcp.f32 %v676_v33  ;;  %v2287_v34 = vpop.f32.mrb[10].mxu0 }
 0x1a9   : > { %v1528_v35 = vpop.eup %1527  ;;  %v1242_v37 = vmul.f32 -1.442695, %v2287_v34  ;;  %v2290_v38 = vpop.f32.mrb[11].mxu0 }
 0x1aa   : > { %v677_v39 = vadd.f32 1.0, %v1528_v35  ;;  %v809_v35 = vpop.xlane.xlu1 %808 }
 0x1ab   : > { %1537 = vpow2.f32 %v1242_v37 }
 0x1ac   : > { %1539 = vrcp.f32 %v677_v39  ;;  %v2292_v40 = vpop.f32.mrb[12].mxu0 }
 0x1ad   : > { %v1530_v41 = vpop.eup %1529  ;;  %v1243_v42 = vmul.f32 -1.442695, %v2292_v40  ;;  %v2295_v43 = vpop.f32.mrb[13].mxu0 }
 0x1ae   : > { %v1532_v36 = vpop.eup %1531  ;;  %v678_v44 = vadd.f32 1.0, %v1530_v41 }
 0x1af   : > { %v723_v46 = vmul.f32 %v1532_v36, %v532_v15  ;;  %1541 = vpow2.f32 %v1243_v42 }
 0x1b0   : > { %1543 = vrcp.f32 %v678_v44  ;;  %v2297_v47 = vpop.f32.mrb[14].mxu0 }
 0x1b1   : > { %v1534_v48 = vpop.eup %1533  ;;  %v739_v49 = vmul.f32 %v723_v46, %v534_v17  ;;  %v1244_v50 = vmul.f32 -1.442695, %v2297_v47  ;;  %v2300_v51 = vpop.f32.mrb[15].mxu0 }
 0x1b2   : > { %v1536_v52 = vpop.eup %1535  ;;  %v679_v53 = vadd.f32 1.0, %v1534_v48 }
 0x1b3   : > { %v724_v54 = vmul.f32 %v1536_v52, %v538_v18  ;;  %1545 = vpow2.f32 %v1244_v50  ;;  %v840_v55 = vmul.f32 %v794_v45, %v739_v49 }
 0x1b4   : > { %1547 = vrcp.f32 %v679_v53  ;;  %v2302_v56 = vpop.f32.mrb[16].mxu0 }
 0x1b5   : > { %v1538_v58 = vpop.eup %1537  ;;  %v740_v59 = vmul.f32 %v724_v54, %v540_v20  ;;  %v1245_v60 = vmul.f32 -1.442695, %v2302_v56  ;;  %v2305_v8 = vpop.f32.mrb[17].mxu0  ;;  %1326 = vmatprep.mubr.f32.mxu1 %v840_v55 }
 0x1b6   : > { %v1540_v61 = vpop.eup %1539  ;;  %v680_v62 = vadd.f32 1.0, %v1538_v58 }
 0x1b7   : > { %v725_v0 = vmul.f32 %v1540_v61, %v544_v21  ;;  %1549 = vpow2.f32 %v1245_v60  ;;  %v841_v1 = vmul.f32 %v797_v57, %v740_v59  ;;  %v815_v57 = vpop.xlane.xlu1 %814 }
 0x1b8   : > { %1551 = vrcp.f32 %v680_v62  ;;  %v2307_v2 = vpop.f32.mrb[18].mxu0 }
 0x1b9   : > { %v1542_v3 = vpop.eup %1541  ;;  %v741_v4 = vmul.f32 %v725_v0, %v546_v23  ;;  %v1246_v5 = vmul.f32 -1.442695, %v2307_v2  ;;  %v2310_v6 = vpop.f32.mrb[19].mxu0  ;;  %1327 = vmatmul.mubr.f32.vlgmr.msra.gmra.mrb[0].mxu1 %v841_v1 }
 0x1ba   : > { %v1544_v7 = vpop.eup %1543  ;;  %v681_v9 = vadd.f32 1.0, %v1542_v3  ;;  %v806_v23 = vpop.xlane.xlu0 %805 }
 0x1bb   : > { %v726_v10 = vmul.f32 %v1544_v7, %v2277_v24  ;;  %1553 = vpow2.f32 %v1246_v5  ;;  %v842_v11 = vmul.f32 %v800_v63, %v741_v4 }
 0x1bc   : > { %1555 = vrcp.f32 %v681_v9  ;;  %v2313_v12 = vpop.f32.mrb[20].mxu0 }
 0x1bd   : > { %v1546_v14 = vpop.eup %1545  ;;  %v742_v15 = vmul.f32 %v726_v10, %v2280_v27  ;;  %v1247_v16 = vmul.f32 -1.442695, %v2313_v12  ;;  %v2317_v17 = vpop.f32.mrb[21].mxu0  ;;  %1329 = vmatprep.mubr.f32.mxu1 %v842_v11 }
 0x1be   : > { %v1548_v18 = vpop.eup %1547  ;;  %v682_v19 = vadd.f32 1.0, %v1546_v14  ;;  %v812_v46 = vpop.xlane.xlu0 %811 }
 0x1bf   : > { %v727_v20 = vmul.f32 %v1548_v18, %v2282_v29  ;;  %1557 = vpow2.f32 %v1247_v16  ;;  %v843_v21 = vmul.f32 %v803_v13, %v742_v15  ;;  %v821_v13 = vpop.xlane.xlu1 %820 }
 0x1c0   : > { %1559 = vrcp.f32 %v682_v19  ;;  %v2320_v22 = vpop.f32.mrb[22].mxu0 }
 0x1c1   : > { %v1550_v24 = vpop.eup %1549  ;;  %v743_v25 = vmul.f32 %v727_v20, %v2285_v32  ;;  %v1248_v26 = vmul.f32 -1.442695, %v2320_v22  ;;  %v2324_v27 = vpop.f32.mrb[23].mxu0  ;;  %1330 = vmatmul.mubr.f32.gmra.mrb[2].mxu1 %v843_v21 }
 0x1c2   : > { %v1552_v28 = vpop.eup %1551  ;;  %v683_v30 = vadd.f32 1.0, %v1550_v24  ;;  %v818_v1 = vpop.xlane.xlu0 %817 }
 0x1c3   : > { %v728_v31 = vmul.f32 %v1552_v28, %v2287_v34  ;;  %1561 = vpow2.f32 %v1248_v26  ;;  %v844_v29 = vmul.f32 %v806_v23, %v743_v25  ;;  %v827_v26 = vpop.xlane.xlu1 %826 }
 0x1c4   : > { %1563 = vrcp.f32 %v683_v30  ;;  %v2327_v33 = vpop.f32.mrb[24].mxu0 }
 0x1c5   : > { %v1554_v37 = vpop.eup %1553  ;;  %v744_v39 = vmul.f32 %v728_v31, %v2290_v38  ;;  %v1249_v32 = vmul.f32 -1.442695, %v2327_v33  ;;  %v2331_v41 = vpop.f32.mrb[25].mxu0  ;;  %1332 = vmatprep.mubr.f32.mxu1 %v844_v29 }
 0x1c6   : > { %v1556_v42 = vpop.eup %1555  ;;  %v684_v36 = vadd.f32 1.0, %v1554_v37  ;;  %v824_v19 = vpop.xlane.xlu0 %823 }
 0x1c7   : > { %v729_v44 = vmul.f32 %v1556_v42, %v2292_v40  ;;  %1565 = vpow2.f32 %v1249_v32  ;;  %v845_v34 = vmul.f32 %v809_v35, %v744_v39  ;;  %v833_v32 = vpop.xlane.xlu1 %832 }
 0x1c8   : > { %1567 = vrcp.f32 %v684_v36  ;;  %v2334_v45 = vpop.f32.mrb[26].mxu0 }
 0x1c9   : > { %v1558_v48 = vpop.eup %1557  ;;  %v745_v49 = vmul.f32 %v729_v44, %v2295_v43  ;;  %v1250_v38 = vmul.f32 -1.442695, %v2334_v45  ;;  %v2338_v50 = vpop.f32.mrb[27].mxu0  ;;  %1333 = vmatmul.mubr.f32.gmra.mrb[4].mxu1 %v845_v34 }
 0x1ca   : > { %v1560_v52 = vpop.eup %1559  ;;  %v685_v53 = vadd.f32 1.0, %v1558_v48  ;;  %v830_v35 = vpop.xlane.xlu0 %829 }
 0x1cb   : > { %v730_v54 = vmul.f32 %v1560_v52, %v2297_v47  ;;  %1569 = vpow2.f32 %v1250_v38  ;;  %v846_v40 = vmul.f32 %v812_v46, %v745_v49 }
 0x1cc   : > { %1571 = vrcp.f32 %v685_v53  ;;  %v2341_v55 = vpop.f32.mrb[28].mxu0  ;;  %v856_v53 = vld [vmem:[#allocation2] sm:$0xff] }
 0x1cd   : > { %v1562_v58 = vpop.eup %1561  ;;  %v746_v59 = vmul.f32 %v730_v54, %v2300_v51  ;;  %v1251_v43 = vmul.f32 -1.442695, %v2341_v55  ;;  %v618_v60 = vpop.f32.mrb[29].mxu0  ;;  %1335 = vmatprep.mubr.f32.mxu1 %v846_v40 }
 0x1ce   : > { %v1564_v61 = vpop.eup %1563  ;;  %v686_v62 = vadd.f32 1.0, %v1562_v58  ;;  %v836_v34 = vpop.xlane.xlu0 %835  ;;  %v858_v58 = vld [vmem:[#allocation2 + $0x10] sm:$0xff] }
 0x1cf   : > { %v731_v63 = vmul.f32 %v1564_v61, %v2302_v56  ;;  %1573 = vpow2.f32 %v1251_v43  ;;  %v847_v0 = vmul.f32 %v815_v57, %v746_v59 }
 0x1d0   : > { %1575 = vrcp.f32 %v686_v62  ;;  %v622_v47 = vpop.f32.mrb[30].mxu0  ;;  %v861_v62 = vld [vmem:[#allocation2 + $0x28] sm:$0xff] }
 0x1d1   : > { %v1566_v3 = vpop.eup %1565  ;;  %v747_v4 = vmul.f32 %v731_v63, %v2305_v8  ;;  %v1252_v5 = vmul.f32 -1.442695, %v622_v47  ;;  %v624_v7 = vpop.f32.mrb[31].mxu0  ;;  %1336 = vmatmul.mubr.f32.gmra.mrb[6].mxu1 %v847_v0  ;;  %v860_v63 = vld [vmem:[#allocation2 + $0x20] sm:$0xff] }
 0x1d2   : > { %v1568_v51 = vpop.eup %1567  ;;  %v687_v9 = vadd.f32 1.0, %v1566_v3 }
 0x1d3   : > { %v732_v10 = vmul.f32 %v1568_v51, %v2307_v2  ;;  %1577 = vpow2.f32 %v1252_v5  ;;  %v848_v11 = vmul.f32 %v818_v1, %v747_v4  ;;  %v863_v4 = vld [vmem:[#allocation2 + $0x38] sm:$0xff]  ;;  %v862_v5 = vld [vmem:[#allocation2 + $0x30] sm:$0xff] }
 0x1d4   : > { %1579 = vrcp.f32 %v687_v9 }
 0x1d5   : > { %v1570_v56 = vpop.eup %1569  ;;  %v748_v14 = vmul.f32 %v732_v10, %v2310_v6  ;;  %1338 = vmatprep.mubr.f32.mxu1 %v848_v11  ;;  %v865_v11 = vld [vmem:[#allocation2 + $0x48] sm:$0xff] }
 0x1d6   : > { %v1572_v15 = vpop.eup %1571  ;;  %v688_v16 = vadd.f32 1.0, %v1570_v56 }
 0x1d7   : > { %v733_v18 = vmul.f32 %v1572_v15, %v2313_v12  ;;  %v849_v8 = vmul.f32 %v821_v13, %v748_v14  ;;  %v864_v13 = vld [vmem:[#allocation2 + $0x40] sm:$0xff] }
 0x1d8   : > { %1581 = vrcp.f32 %v688_v16 }
 0x1d9   : > { %v1574_v20 = vpop.eup %1573  ;;  %v749_v21 = vmul.f32 %v733_v18, %v2317_v17  ;;  %1339 = vmatmul.mubr.f32.gmra.mrb[8].mxu1 %v849_v8  ;;  %v867_v18 = vld [vmem:[#allocation2 + $0x58] sm:$0xff]  ;;  %v866_v8 = vld [vmem:[#allocation2 + $0x50] sm:$0xff] }
 0x1da   : > { %v1576_v2 = vpop.eup %1575  ;;  %v689_v23 = vadd.f32 1.0, %v1574_v20 }
 0x1db   : > { %v734_v24 = vmul.f32 %v1576_v2, %v2320_v22  ;;  %v850_v25 = vmul.f32 %v824_v19, %v749_v21 }
 0x1dc   : > { %1583 = vrcp.f32 %v689_v23  ;;  %v869_v23 = vld [vmem:[#allocation2 + $0x68] sm:$0xff] }
 0x1dd   : > { %v1578_v6 = vpop.eup %1577  ;;  %v750_v28 = vmul.f32 %v734_v24, %v2324_v27  ;;  %1341 = vmatprep.mubr.f32.mxu1 %v850_v25  ;;  %v868_v24 = vld [vmem:[#allocation2 + $0x60] sm:$0xff] }
 0x1de   : > { %v1580_v30 = vpop.eup %1579  ;;  %v690_v12 = vadd.f32 1.0, %v1578_v6 }
 0x1df   : > { %v735_v31 = vmul.f32 %v1580_v30, %v2327_v33  ;;  %v851_v29 = vmul.f32 %v827_v26, %v750_v28  ;;  %v871_v30 = vld [vmem:[#allocation2 + $0x78] sm:$0xff] }
 0x1e0   : > { %1585 = vrcp.f32 %v690_v12  ;;  %v870_v12 = vld [vmem:[#allocation2 + $0x70] sm:$0xff] }
 0x1e1   : > { %v751_v17 = vmul.f32 %v735_v31, %v2331_v41  ;;  %1342 = vmatmul.mubr.f32.gmra.mrb[10].mxu1 %v851_v29  ;;  %v839_v41 = vpop.xlane.xlu1 %838 }
 0x1e2   : > { %v1582_v37 = vpop.eup %1581 }
 0x1e3   : > { %v736_v22 = vmul.f32 %v1582_v37, %v2334_v45  ;;  %v852_v39 = vmul.f32 %v830_v35, %v751_v17  ;;  %v857_v45 = vld [vmem:[#allocation2 + $0x8] sm:$0xff] }
 0x1e5   : > { %v752_v42 = vmul.f32 %v736_v22, %v2338_v50  ;;  %1344 = vmatprep.mubr.f32.mxu1 %v852_v39 }
 0x1e6   : > { %v1584_v27 = vpop.eup %1583 }
 0x1e7   : > { %v737_v36 = vmul.f32 %v1584_v27, %v2341_v55  ;;  %v853_v44 = vmul.f32 %v833_v32, %v752_v42  ;;  %v859_v55 = vld [vmem:[#allocation2 + $0x18] sm:$0xff] }
 0x1e9   : > { %v753_v33 = vmul.f32 %v737_v36, %v618_v60  ;;  %1345 = vmatmul.mubr.f32.gmra.mrb[12].mxu1 %v853_v44 }
 0x1ea   : > { %v1586_v46 = vpop.eup %1585 }
 0x1eb   : > { %v738_v48 = vmul.f32 %v1586_v46, %v622_v47  ;;  %v854_v49 = vmul.f32 %v836_v34, %v753_v33 }
 0x1ed   : > { %v754_v38 = vmul.f32 %v738_v48, %v624_v7  ;;  %1347 = vmatprep.mubr.f32.mxu1 %v854_v49 }
 0x1ef   : > { %v855_v52 = vmul.f32 %v839_v41, %v754_v38 }
 0x1f1   : > { %1348 = vmatmul.mubr.f32.gmra.mrb[14].mxu1 %v855_v52 }
 0x28c   : > { %v1328_v54 = vpop.f32.mrb[0].mxu1 }
 0x28d   : > { %v1018_v50 = vadd.f32 %v1328_v54, %v857_v45  ;;  %v938_v40 = vpop.f32.mrb[1].mxu1 }
 0x28e   : > { %v1017_v57 = vadd.f32 %v938_v40, %v856_v53 }
 0x28f   : > { %1034 = vst [vmem:[#allocation2 + $0x8] sm:$0xff] %v1018_v50 }
 0x290   : > { %1033 = vst [vmem:[#allocation2] sm:$0xff] %v1017_v57 }
 0x294   : > { %v1331_v59 = vpop.f32.mrb[2].mxu1 }
 0x295   : > { %v1020_v43 = vadd.f32 %v1331_v59, %v859_v55  ;;  %v948_v60 = vpop.f32.mrb[3].mxu1 }
 0x296   : > { %v1019_v61 = vadd.f32 %v948_v60, %v858_v58 }
 0x297   : > { %1036 = vst [vmem:[#allocation2 + $0x18] sm:$0xff] %v1020_v43 }
 0x298   : > { %1035 = vst [vmem:[#allocation2 + $0x10] sm:$0xff] %v1019_v61 }
 0x29c   : > { %v1334_v0 = vpop.f32.mrb[4].mxu1 }
 0x29d   : > { %v1022_v47 = vadd.f32 %v1334_v0, %v861_v62  ;;  %v958_v1 = vpop.f32.mrb[5].mxu1 }
 0x29e   : > { %v1021_v3 = vadd.f32 %v958_v1, %v860_v63 }
 0x29f   : > { %1038 = vst [vmem:[#allocation2 + $0x28] sm:$0xff] %v1022_v47 }
 0x2a0   : > { %1037 = vst [vmem:[#allocation2 + $0x20] sm:$0xff] %v1021_v3 }
 0x2a4   : > { %v1337_v7 = vpop.f32.mrb[6].mxu1 }
 0x2a5   : > { %v1024_v51 = vadd.f32 %v1337_v7, %v863_v4  ;;  %v968_v9 = vpop.f32.mrb[7].mxu1 }
 0x2a6   : > { %v1023_v10 = vadd.f32 %v968_v9, %v862_v5 }
 0x2a7   : > { %1040 = vst [vmem:[#allocation2 + $0x38] sm:$0xff] %v1024_v51 }
 0x2a8   : > { %1039 = vst [vmem:[#allocation2 + $0x30] sm:$0xff] %v1023_v10 }
 0x2ac   : > { %v1340_v56 = vpop.f32.mrb[8].mxu1 }
 0x2ad   : > { %v1026_v14 = vadd.f32 %v1340_v56, %v865_v11  ;;  %v978_v15 = vpop.f32.mrb[9].mxu1 }
 0x2ae   : > { %v1025_v16 = vadd.f32 %v978_v15, %v864_v13 }
 0x2af   : > { %1042 = vst [vmem:[#allocation2 + $0x48] sm:$0xff] %v1026_v14 }
 0x2b0   : > { %1041 = vst [vmem:[#allocation2 + $0x40] sm:$0xff] %v1025_v16 }
 0x2b4   : > { %v1343_v19 = vpop.f32.mrb[10].mxu1 }
 0x2b5   : > { %v1028_v20 = vadd.f32 %v1343_v19, %v867_v18  ;;  %v988_v21 = vpop.f32.mrb[11].mxu1 }
 0x2b6   : > { %v1027_v2 = vadd.f32 %v988_v21, %v866_v8 }
 0x2b7   : > { %1044 = vst [vmem:[#allocation2 + $0x58] sm:$0xff] %v1028_v20 }
 0x2b8   : > { %1043 = vst [vmem:[#allocation2 + $0x50] sm:$0xff] %v1027_v2 }
 0x2bc   : > { %v1346_v25 = vpop.f32.mrb[12].mxu1 }
 0x2bd   : > { %v1030_v26 = vadd.f32 %v1346_v25, %v869_v23  ;;  %v998_v6 = vpop.f32.mrb[13].mxu1 }
 0x2be   : > { %v1029_v28 = vadd.f32 %v998_v6, %v868_v24 }
 0x2bf   : > { %1046 = vst [vmem:[#allocation2 + $0x68] sm:$0xff] %v1030_v26 }
 0x2c0   : > { %1045 = vst [vmem:[#allocation2 + $0x60] sm:$0xff] %v1029_v28 }
 0x2c4   : > { %v1349_v31 = vpop.f32.mrb[14].mxu1 }
 0x2c5   : > { %v1032_v29 = vadd.f32 %v1349_v31, %v871_v30  ;;  %v1008_v35 = vpop.f32.mrb[15].mxu1 }
 0x2c6   : > { %v1031_v17 = vadd.f32 %v1008_v35, %v870_v12 }
 0x2c7   : > { %1048 = vst [vmem:[#allocation2 + $0x78] sm:$0xff] %v1032_v29 }
 0x2c8   : > { %1047 = vst [vmem:[#allocation2 + $0x70] sm:$0xff] %v1031_v17 }
 0x2c9 PF: > { %p1049_p9 = scmp.eq.s32.totalorder %s1773_s11, 3 }
 0x2ca   : > { %v1054_v37 = vld [vmem:[#allocation2] sm:$0xff] (%p1049_p9)  ;;  %v1055_v22 = vld [vmem:[#allocation2 + $0x8] sm:$0xff] (%p1049_p9)  ;;  %v1056_v39 = vld [vmem:[#allocation2 + $0x10] sm:$0xff] (%p1049_p9) }
 0x2cb   : > { %1053 = sbr.rel (!%p1049_p9) target bundleno = 723 (0x2d3), region = 56  ;;  %1070 = vst [vmem:[#allocation11] sm:$0xff] (%p1049_p9), %v1054_v37  ;;  %1071 = vst [vmem:[#allocation11 + $0x8] sm:$0xff] (%p1049_p9), %v1055_v22  ;;  %v1057_v32 = vld [vmem:[#allocation2 + $0x18] sm:$0xff] (%p1049_p9)  ;;  %v1058_v42 = vld [vmem:[#allocation2 + $0x20] sm:$0xff] (%p1049_p9) }
 0x2cc   : > { %1072 = vst [vmem:[#allocation11 + $0x10] sm:$0xff] (%p1049_p9), %v1056_v39  ;;  %v1059_v27 = vld [vmem:[#allocation2 + $0x28] sm:$0xff] (%p1049_p9)  ;;  %1073 = vst [vmem:[#allocation11 + $0x18] sm:$0xff] (%p1049_p9), %v1057_v32  ;;  %v1060_v36 = vld [vmem:[#allocation2 + $0x30] sm:$0xff] (%p1049_p9) }
 0x2cd   : > { %1074 = vst [vmem:[#allocation11 + $0x20] sm:$0xff] (%p1049_p9), %v1058_v42  ;;  %1075 = vst [vmem:[#allocation11 + $0x28] sm:$0xff] (%p1049_p9), %v1059_v27  ;;  %v1061_v44 = vld [vmem:[#allocation2 + $0x38] sm:$0xff] (%p1049_p9)  ;;  %v1062_v34 = vld [vmem:[#allocation2 + $0x40] sm:$0xff] (%p1049_p9) }
 0x2ce   : > { %1076 = vst [vmem:[#allocation11 + $0x30] sm:$0xff] (%p1049_p9), %v1060_v36  ;;  %1077 = vst [vmem:[#allocation11 + $0x38] sm:$0xff] (%p1049_p9), %v1061_v44  ;;  %v1063_v33 = vld [vmem:[#allocation2 + $0x48] sm:$0xff] (%p1049_p9)  ;;  %v1064_v46 = vld [vmem:[#allocation2 + $0x50] sm:$0xff] (%p1049_p9) }
 0x2cf   : > { %1078 = vst [vmem:[#allocation11 + $0x40] sm:$0xff] (%p1049_p9), %v1062_v34  ;;  %v1065_v48 = vld [vmem:[#allocation2 + $0x58] sm:$0xff] (%p1049_p9)  ;;  %1079 = vst [vmem:[#allocation11 + $0x48] sm:$0xff] (%p1049_p9), %v1063_v33  ;;  %v1066_v49 = vld [vmem:[#allocation2 + $0x60] sm:$0xff] (%p1049_p9) }
 0x2d0   : > { %1080 = vst [vmem:[#allocation11 + $0x50] sm:$0xff] (%p1049_p9), %v1064_v46  ;;  %1081 = vst [vmem:[#allocation11 + $0x58] sm:$0xff] (%p1049_p9), %v1065_v48  ;;  %v1067_v41 = vld [vmem:[#allocation2 + $0x68] sm:$0xff] (%p1049_p9)  ;;  %v1068_v38 = vld [vmem:[#allocation2 + $0x70] sm:$0xff] (%p1049_p9) }
 0x2d1   : > { %1082 = vst [vmem:[#allocation11 + $0x60] sm:$0xff] (%p1049_p9), %v1066_v49  ;;  %1083 = vst [vmem:[#allocation11 + $0x68] sm:$0xff] (%p1049_p9), %v1067_v41  ;;  %v1069_v52 = vld [vmem:[#allocation2 + $0x78] sm:$0xff] (%p1049_p9) }
 0x2d2   : > { %1084 = vst [vmem:[#allocation11 + $0x70] sm:$0xff] %v1068_v38  ;;  %1085 = vst [vmem:[#allocation11 + $0x78] sm:$0xff] %v1069_v52 }
 0x2d3 PF: > { %s2443_s11 = sadd.s32 4294967295, %s1781_s13   ;;  %s1793_s15 = smov [#allocation11]  }
 0x2d4   : > { %p2361_p1 = scmp.eq.s32.totalorder %s2443_s11, 3  ;;  %s1095_s25 = sshll.u32 %s1793_s15, 4  ;;  %s1096_s25 = int_to_ptr.vmem [resolvable:$true] %s1095_s25 }
 0x2d5   : > { %s1671_s29 = scalar_lea.vmem %s1096_s25, 2048  ;;  %p1678_p13 = scmp.lt.s32.totalorder %s1096_s25, %s1096_s25 }
 0x2d6   : > { %p1672_p7 = scmp.ne.s32.totalorder %s1096_s25, %s1671_s29  ;;  %p1679_p6 = scmp.lt.s32.totalorder %s1671_s29, %s1671_s29 }
 0x2d8   : > { %p1673_p4 = pnand %p1672_p7, %p2361_p1  ;;  %p1680_p12 = por %p1679_p6, %p1678_p13 }
 0x2da   : > { %p1674_p0 = pneg %p1673_p4 }
 0x2dc   : > { %p1681_p2 = pnand %p1680_p12, %p1674_p0 }
 0x2de   : > { %1684 = shalt.err (!%p1681_p2)
}
 0x2df   : > { %s1685_s19 = scalar_lea.hbm %s2419_s6, 2048 }
 0x2e0   : > { %p1686_p8 = scmp.ne.s32.totalorder %s2419_s6, %s1685_s19  ;;  %p1691_p10 = scmp.lt.u32.totalorder %s1685_s19, %s2419_s6 }
 0x2e2   : > { %p1687_p5 = pnand %p1686_p8, %p2361_p1 }
 0x2e4   : > { %p1688_p3 = pneg %p1687_p5 }
 0x2e6   : > { %p1693_p11 = pnand %p1691_p10, %p1688_p3 }
 0x2e8   : > { %1696 = shalt.err (!%p1693_p11)
}
 0x2e9   : > { %s1794_s18 = smov 128   ;;  %s1795_s16 = smov 8  }
 0x2ea   : > { %1423 = dma.vmem_to_hbm [thread:$0]  (%p2361_p1), %s1096_s25, 2048, %s2419_s6, [#allocation8], %s1794_s18, %s1794_s18, %s1795_s16  }
 0x2eb   : > { %1744 = dma.done.wait (%p2361_p1), [#allocation8], 2048  }
 0x2ec   : > { %1746 = vsyncadd (%p2361_p1), [#allocation8], 4294965248 }
 0x2ed PF: > { %s33_s13 = sadd.s32 1, %s1781_s13   ;;  %s2445_s1 = smov %s1753_s30 }
 0x2ee   : > { %p30_p9 = scmp.ge.s32.totalorder %s33_s13, 6   ;;  %s2446_s30 = smov %s1757_s7 }
 0x2ef   : > { %s2447_s7 = smov %s2004_s26  ;;  %s2448_s8 = smov %s1765_s9 }
 0x2f0   : > { %s2449_s9 = smov %s1769_s10  ;;  %s2450_s10 = smov %s1925_s0 }
 0x2f1   : > { %s2451_s11 = smov %s1777_s12  ;;  %s2452_s12 = smov %s2454_s14 }
 0x2f2   :  { %32 = sbr.rel (!%p30_p9) target bundleno = 35 (0x23), region = 105 }
 0x2f9   :  { %1111 = vsyncpa [#allocation7], 1 }
 0x2fa   :  { %1113 = vsyncpa [#allocation7 + $0x1], 1 }
 0x2fb   :  { %1114 = vsyncpa [#allocation10], 1 }
 0x2fc   :  { %1116 = vsyncpa [#allocation10 + $0x1], 1 }
 0x2fd   :  { %1117 = vsyncpa [#allocation8], 1 }
 0x2fe   :  { %1119 = vsyncpa [#allocation8 + $0x1], 1 }

</bundles_post_ra>
